<compile_context>
chip_gen: v6e
topology: v6e:2x2x1
jax: 0.10.0
libtpu: 0.0.40
codegen_flags: <defaults>
</compile_context>

<pallas_src>
import functools

import jax
import jax.numpy as jnp
from jax.experimental import pallas as pl
from jax.experimental.pallas import tpu as pltpu

_VMEM = pl.BlockSpec(memory_space=pltpu.MemorySpace.VMEM)
_SMEM = pl.BlockSpec(memory_space=pltpu.MemorySpace.SMEM)

# MXU operand dtype: bf16 inputs, f32 accumulation (full-rate on v6e/v7x MXU).
_DOT_DTYPE = jnp.bfloat16
_NEG_SLOPE = 0.01      # torch.nn.LeakyReLU() default
_BN_EPS = 1e-5         # torch.nn.BatchNorm1d default


# --------------------------------------------------------------------------
# Style Linear kernel (tiny 2-D matmul)
# --------------------------------------------------------------------------
def _style_linear_kernel(x_ref, w_ref, b_ref, o_ref):
    o_ref[...] = (
        jnp.dot(x_ref[...], w_ref[...], preferred_element_type=jnp.float32)
        + b_ref[...])


def style_linear(x, w, b):
    B = x.shape[0]
    Fout = w.shape[1]
    return pl.pallas_call(
        _style_linear_kernel,
        out_shape=jax.ShapeDtypeStruct((B, Fout), jnp.float32),
        in_specs=[_VMEM, _VMEM, _VMEM],
        out_specs=_VMEM,
    )(x, w, b)


# --------------------------------------------------------------------------
# Fused forward kernel
# --------------------------------------------------------------------------
def _shifted(x, d, mode):
    """y[..., l] = x[..., l + d] with circular or zero boundary (static d)."""
    if d == 0:
        return x
    L = x.shape[-1]
    if mode == "circular":
        if d > 0:
            return jnp.concatenate([x[..., d:], x[..., :d]], axis=-1)
        return jnp.concatenate([x[..., L + d:], x[..., :L + d]], axis=-1)
    # zero padding ("same" conv with padding_mode='zeros')
    zpad = jnp.zeros(x.shape[:-1] + (abs(d),), x.dtype)
    if d > 0:
        return jnp.concatenate([x[..., d:], zpad], axis=-1)
    return jnp.concatenate([zpad, x[..., :L + d]], axis=-1)


def _make_refine_kernel(*, K, Co, n_temporal, n_freq, has_pe):
    P = K // 2

    def conv_layer(h, w2, bias, mode):
        # h: (B, Cin, L) f32; w2: (Cout, K*Cin) bf16; bias: (1, Cout, 1) f32.
        # im2col: stack K shifted copies along channels -> one batched MXU
        # matmul (contraction K*Cin) instead of K tiny per-tap dots.
        B_ = h.shape[0]
        Cout, M = w2.shape
        xcol = jnp.concatenate([_shifted(h, k - P, mode) for k in range(K)],
                               axis=1)                        # (B, K*Cin, L)
        w_b = jnp.broadcast_to(w2[None], (B_, Cout, M))
        out = jnp.einsum("bom,bml->bol", w_b, xcol.astype(_DOT_DTYPE),
                         preferred_element_type=jnp.float32)
        return out + bias

    def bn_leaky(y):
        # BatchNorm1d of a fresh module in training mode: batch statistics
        # over (B, L) per channel, gamma=1, beta=0; then LeakyReLU(0.01).
        mean = jnp.mean(y, axis=(0, 2), keepdims=True)
        var = jnp.mean(jnp.square(y - mean), axis=(0, 2), keepdims=True)
        yn = (y - mean) * jax.lax.rsqrt(var + _BN_EPS)
        return jnp.where(yn >= 0.0, yn, _NEG_SLOPE * yn)

    def kernel(*refs):
        it = iter(refs)
        ns_ref = next(it)        # (1, 1)  SMEM  noise_scale
        cs_ref = next(it)        # (B, Cs, L)    clips ++ style (pre-noise)
        noise_ref = next(it)     # (B, Cs, L)    uniform noise in [-1, 1]
        cre_ref = next(it)       # (L, F) bf16   rfft cos
        cim_ref = next(it)       # (L, F) bf16   rfft -sin
        ire_ref = next(it)       # (F, L) bf16   irfft cos (hermitian-weighted)
        iim_ref = next(it)       # (F, L) bf16   irfft -sin
        pe_ref = next(it) if has_pe else None
        t_wb = [(next(it), next(it)) for _ in range(n_temporal)]
        f_wb = [(next(it), next(it)) for _ in range(n_freq)]
        out_ref = next(it)

        cs = cs_ref[...]
        B_, _, L_ = cs.shape
        F_ = cre_ref.shape[1]

        # additive uniform noise, x0 = clip_and_style + noise_scale * u
        x0 = cs + ns_ref[0, 0] * noise_ref[...]               # (B, Cs, L)

        # ---- rfft (norm='ortho') as batched DFT matmuls -------------------
        x0d = x0.astype(_DOT_DTYPE)
        cre_b = jnp.broadcast_to(cre_ref[...][None], (B_, L_, F_))
        cim_b = jnp.broadcast_to(cim_ref[...][None], (B_, L_, F_))
        re = jnp.einsum("bcl,blf->bcf", x0d, cre_b,
                        preferred_element_type=jnp.float32)
        im = jnp.einsum("bcl,blf->bcf", x0d, cim_b,
                        preferred_element_type=jnp.float32)
        h = jnp.concatenate([re, im], axis=1)                 # (B, 2*Cs, F)

        # ---- frequency pathway: zero-padded convs + positional features ---
        if has_pe:
            pe_b = jnp.broadcast_to(pe_ref[...][None], (B_,) + pe_ref.shape)
        for i, (w_ref, b_ref) in enumerate(f_wb):
            if has_pe:
                h = jnp.concatenate([h, pe_b], axis=1)
            h = conv_layer(h, w_ref[...], b_ref[...], "zeros")
            if i + 1 < n_freq:
                h = bn_leaky(h)
        x2 = h                                                # (B, 2*Co, F)

        # ---- irfft (norm='ortho') ------------------------------------------
        ire_b = jnp.broadcast_to(ire_ref[...][None], (B_, F_, L_))
        iim_b = jnp.broadcast_to(iim_ref[...][None], (B_, F_, L_))
        xr = x2[:, :Co, :].astype(_DOT_DTYPE)
        xi = x2[:, Co:, :].astype(_DOT_DTYPE)
        x4 = (jnp.einsum("bcf,bfl->bcl", xr, ire_b,
                         preferred_element_type=jnp.float32)
              + jnp.einsum("bcf,bfl->bcl", xi, iim_b,
                           preferred_element_type=jnp.float32))

        # ---- temporal pathway: circular convs ------------------------------
        h = x0
        for i, (w_ref, b_ref) in enumerate(t_wb):
            h = conv_layer(h, w_ref[...], b_ref[...], "circular")
            if i + 1 < n_temporal:
                h = bn_leaky(h)
        x5 = h                                                # (B, Co, L)

        # ---- residual sum; single store of the output ----------------------
        out_ref[...] = cs[:, :Co, :] + x4 + x5

    return kernel


# --------------------------------------------------------------------------
# Constants, parameter init, forward wrapper
# --------------------------------------------------------------------------
def make_positional_encoding(num_features, length):
    # TODO(synk): original make_positional_encoding source not provided;
    # using a standard sinusoidal encoding of shape (num_features, length).
    pos = jnp.arange(length, dtype=jnp.float32)
    i = jnp.arange(num_features)
    freqs = jnp.power(
        jnp.float32(10000.0),
        -(2.0 * jnp.floor(i.astype(jnp.float32) / 2.0)) / max(num_features, 1))
    ang = freqs[:, None] * pos[None, :]
    pe = jnp.where((i % 2 == 0)[:, None], jnp.sin(ang), jnp.cos(ang))
    return pe.astype(jnp.float32)


def build_dft_matrices(N):
    # rfft / irfft with norm='ortho' expressed as real matmuls.
    F = N // 2 + 1
    n = jnp.arange(N, dtype=jnp.float32)
    f = jnp.arange(F, dtype=jnp.float32)
    scale = 1.0 / jnp.sqrt(jnp.float32(N))
    ang_fwd = 2.0 * jnp.pi * jnp.outer(n, f) / N              # (N, F)
    cre = jnp.cos(ang_fwd) * scale
    cim = -jnp.sin(ang_fwd) * scale
    ang_inv = 2.0 * jnp.pi * jnp.outer(f, n) / N              # (F, N)
    wts = jnp.full((F,), 2.0, jnp.float32).at[0].set(1.0)
    if N % 2 == 0:
        wts = wts.at[F - 1].set(1.0)
    ire = wts[:, None] * jnp.cos(ang_inv) * scale
    iim = -wts[:, None] * jnp.sin(ang_inv) * scale
    return cre, cim, ire, iim


def _uniform(key, shape, bound):
    return jax.random.uniform(key, shape, jnp.float32, minval=-bound, maxval=bound)


def init_refine_audio(key, *, sample_count, kernel_size, num_input_features,
                      num_output_features, positional_features, hidden_features,
                      num_hidden_layers, num_input_style_features,
                      num_hidden_style_features):
    assert kernel_size % 2 == 1
    keys = iter(jax.random.split(key, 64))
    p = {}

    # style_transform: Linear(num_input_style_features -> sample_count * Sh)
    fin = num_input_style_features
    fout = sample_count * num_hidden_style_features
    bound = 1.0 / (fin ** 0.5)
    p["style_w"] = _uniform(next(keys), (fin, fout), bound)    # (Fin, Fout)
    p["style_b"] = _uniform(next(keys), (1, fout), bound)
    p["noise_scale"] = jnp.array(0.1, jnp.float32)

    Cs = num_input_features + num_hidden_style_features
    K = kernel_size
    temporal_sizes = (Cs,) + (hidden_features,) * num_hidden_layers \
        + (num_output_features,)
    freq_sizes = (2 * Cs,) + (2 * hidden_features,) * num_hidden_layers \
        + (2 * num_output_features,)

    def make_convs(sizes, pos_feat):
        convs = []
        for i in range(len(sizes) - 1):
            cin = sizes[i] + pos_feat
            cout = sizes[i + 1]
            b_ = 1.0 / ((cin * K) ** 0.5)
            # im2col weight layout: (Cout, K*Cin), columns tap-major/channel-minor,
            # stored bf16 (matmuls accumulate in f32).
            w = _uniform(next(keys), (cout, K * cin), b_).astype(_DOT_DTYPE)
            b = _uniform(next(keys), (cout,), b_).reshape(1, cout, 1)
            convs.append((w, b))
        return convs

    p["temporal_convs"] = make_convs(temporal_sizes, 0)
    p["freq_convs"] = make_convs(freq_sizes, positional_features)
    p["freq_pos_enc"] = make_positional_encoding(
        positional_features, sample_count // 2 + 1)
    cre, cim, ire, iim = build_dft_matrices(sample_count)
    p["dft"] = tuple(m.astype(_DOT_DTYPE) for m in (cre, cim, ire, iim))
    return p


def refine_audio_forward(p, clips, styles, noise_key, *, num_output_features):
    B, Ci, L = clips.shape
    Co = num_output_features
    Sh = p["style_w"].shape[1] // L
    Cs = Ci + Sh

    # style transform (Pallas matmul) + reshape/concat glue (layout only)
    st = style_linear(styles, p["style_w"], p["style_b"]).reshape(B, Sh, L)
    clip_and_style = jnp.concatenate([clips, st], axis=1)     # (B, Cs, L)

    noise = jax.random.uniform(noise_key, (B, Cs, L), jnp.float32,
                               minval=-1.0, maxval=1.0)
    noise_scale = jnp.reshape(p["noise_scale"], (1, 1))

    cre, cim, ire, iim = p["dft"]
    pe = p["freq_pos_enc"]
    has_pe = pe.shape[0] > 0
    K = p["temporal_convs"][0][0].shape[1] // Cs              # kernel_size
    n_t = len(p["temporal_convs"])
    n_f = len(p["freq_convs"])

    inputs = [noise_scale, clip_and_style, noise, cre, cim, ire, iim]
    in_specs = [_SMEM] + [_VMEM] * 6
    if has_pe:
        inputs.append(pe)
        in_specs.append(_VMEM)
    for w, b in p["temporal_convs"] + p["freq_convs"]:
        inputs.extend([w, b])
        in_specs.extend([_VMEM, _VMEM])

    kernel = _make_refine_kernel(K=K, Co=Co, n_temporal=n_t, n_freq=n_f,
                                 has_pe=has_pe)
    # TODO(synk): for large sample_count, tile the DFT matmuls / conv stacks
    # with a BlockSpec grid (pipelined blocks over F/L, "parallel" axis for
    # v7x's two TensorCores) instead of whole-array VMEM residency.
    return pl.pallas_call(
        kernel,
        out_shape=jax.ShapeDtypeStruct((B, Co, L), jnp.float32),
        in_specs=in_specs,
        out_specs=_VMEM,
        compiler_params=pltpu.CompilerParams(
            vmem_limit_bytes=32 * 1024 * 1024),
    )(*inputs)


# --------------------------------------------------------------------------
if __name__ == "__main__":
    key = jax.random.PRNGKey(0)
    k_param, k_clips, k_styles, k_noise = jax.random.split(key, 4)

    B = 2
    sample_count = 16
    kernel_size = 3
    num_input_features = 4
    num_output_features = 2
    positional_features = 2
    hidden_features = 8
    num_hidden_layers = 2
    num_input_style_features = 6
    num_hidden_style_features = 3

    params = init_refine_audio(
        k_param,
        sample_count=sample_count,
        kernel_size=kernel_size,
        num_input_features=num_input_features,
        num_output_features=num_output_features,
        positional_features=positional_features,
        hidden_features=hidden_features,
        num_hidden_layers=num_hidden_layers,
        num_input_style_features=num_input_style_features,
        num_hidden_style_features=num_hidden_style_features,
    )

    clips = jax.random.normal(
        k_clips, (B, num_input_features, sample_count), jnp.float32)
    styles = jax.random.normal(
        k_styles, (B, num_input_style_features), jnp.float32)

    fwd = jax.jit(functools.partial(
        refine_audio_forward, num_output_features=num_output_features))
    out = jax.block_until_ready(fwd(params, clips, styles, k_noise))

    assert out.shape == (B, num_output_features, sample_count)
    assert out.dtype == jnp.float32
    print("KERNEL_OK")
</pallas_src>

<mosaic_0001>
module attributes {stable_mosaic.version = 11 : i64} {
  func.func @_style_linear_kernel(%arg0: memref<2x6xf32, #tpu.memory_space<vmem>>, %arg1: memref<6x48xf32, #tpu.memory_space<vmem>>, %arg2: memref<1x48xf32, #tpu.memory_space<vmem>>, %arg3: memref<2x48xf32, #tpu.memory_space<vmem>>) attributes {dimension_semantics = [], scalar_prefetch = 0 : i64, scratch_operands = 0 : i64, tpu.core_type = #tpu.core_type<tc>} {
    %c0 = arith.constant 0 : index
    %c0_0 = arith.constant 0 : index
    %0 = vector.load %arg0[%c0, %c0_0] : memref<2x6xf32, #tpu.memory_space<vmem>>, vector<2x6xf32>
    %c0_1 = arith.constant 0 : index
    %c0_2 = arith.constant 0 : index
    %1 = vector.load %arg1[%c0_1, %c0_2] : memref<6x48xf32, #tpu.memory_space<vmem>>, vector<6x48xf32>
    %cst = arith.constant dense<0.000000e+00> : vector<2x48xf32>
    %2 = tpu.matmul %0, %1, %cst {dimension_numbers = #tpu.dot_dimension_numbers<[1], [0], [0], [1], [0, 0, 1, 1], [], []>} : vector<2x6xf32>, vector<6x48xf32>, vector<2x48xf32> -> vector<2x48xf32>
    %c0_3 = arith.constant 0 : index
    %c0_4 = arith.constant 0 : index
    %3 = vector.load %arg2[%c0_3, %c0_4] : memref<1x48xf32, #tpu.memory_space<vmem>>, vector<1x48xf32>
    %4 = vector.broadcast %3 : vector<1x48xf32> to vector<2x48xf32>
    %5 = arith.addf %2, %4 : vector<2x48xf32>
    %c0_5 = arith.constant 0 : index
    %c0_6 = arith.constant 0 : index
    %6 = vector.load %arg3[%c0_5, %c0_6] : memref<2x48xf32, #tpu.memory_space<vmem>>, vector<2x48xf32>
    tpu.vector_store %arg3[%c0_5, %c0_6], %5 {strides = array<i32>} : memref<2x48xf32, #tpu.memory_space<vmem>>, vector<2x48xf32>,
    return
  }
}

module attributes {stable_mosaic.version = 11 : i64} {
  func.func @kernel(%arg0: memref<1x1xf32, #tpu.memory_space<smem>>, %arg1: memref<2x7x16xf32, #tpu.memory_space<vmem>>, %arg2: memref<2x7x16xf32, #tpu.memory_space<vmem>>, %arg3: memref<16x9xbf16, #tpu.memory_space<vmem>>, %arg4: memref<16x9xbf16, #tpu.memory_space<vmem>>, %arg5: memref<9x16xbf16, #tpu.memory_space<vmem>>, %arg6: memref<9x16xbf16, #tpu.memory_space<vmem>>, %arg7: memref<2x9xf32, #tpu.memory_space<vmem>>, %arg8: memref<8x21xbf16, #tpu.memory_space<vmem>>, %arg9: memref<1x8x1xf32, #tpu.memory_space<vmem>>, %arg10: memref<8x24xbf16, #tpu.memory_space<vmem>>, %arg11: memref<1x8x1xf32, #tpu.memory_space<vmem>>, %arg12: memref<2x24xbf16, #tpu.memory_space<vmem>>, %arg13: memref<1x2x1xf32, #tpu.memory_space<vmem>>, %arg14: memref<16x48xbf16, #tpu.memory_space<vmem>>, %arg15: memref<1x16x1xf32, #tpu.memory_space<vmem>>, %arg16: memref<16x54xbf16, #tpu.memory_space<vmem>>, %arg17: memref<1x16x1xf32, #tpu.memory_space<vmem>>, %arg18: memref<4x54xbf16, #tpu.memory_space<vmem>>, %arg19: memref<1x4x1xf32, #tpu.memory_space<vmem>>, %arg20: memref<2x2x16xf32, #tpu.memory_space<vmem>>) attributes {dimension_semantics = [], scalar_prefetch = 0 : i64, scratch_operands = 0 : i64, tpu.core_type = #tpu.core_type<tc>} {
    %c0 = arith.constant 0 : index
    %c0_0 = arith.constant 0 : index
    %c0_1 = arith.constant 0 : index
    %0 = vector.load %arg1[%c0, %c0_0, %c0_1] : memref<2x7x16xf32, #tpu.memory_space<vmem>>, vector<2x7x16xf32>
    %c0_2 = arith.constant 0 : index
    %c0_3 = arith.constant 0 : index
    %1 = memref.load %arg0[%c0_2, %c0_3] : memref<1x1xf32, #tpu.memory_space<smem>>
    %c0_4 = arith.constant 0 : index
    %c0_5 = arith.constant 0 : index
    %c0_6 = arith.constant 0 : index
    %2 = vector.load %arg2[%c0_4, %c0_5, %c0_6] : memref<2x7x16xf32, #tpu.memory_space<vmem>>, vector<2x7x16xf32>
    %3 = vector.broadcast %1 : f32 to vector<2x7x16xf32>
    %4 = arith.mulf %3, %2 : vector<2x7x16xf32>
    %5 = arith.addf %0, %4 : vector<2x7x16xf32>
    %6 = arith.truncf %5 : vector<2x7x16xf32> to vector<2x7x16xbf16>
    %c0_7 = arith.constant 0 : index
    %c0_8 = arith.constant 0 : index
    %7 = vector.load %arg3[%c0_7, %c0_8] : memref<16x9xbf16, #tpu.memory_space<vmem>>, vector<16x9xbf16>
    %8 = vector.shape_cast %7 : vector<16x9xbf16> to vector<1x16x9xbf16>
    %9 = vector.shape_cast %8 : vector<1x16x9xbf16> to vector<1x16x9xbf16>
    %10 = vector.broadcast %9 : vector<1x16x9xbf16> to vector<2x16x9xbf16>
    %c0_9 = arith.constant 0 : index
    %c0_10 = arith.constant 0 : index
    %11 = vector.load %arg4[%c0_9, %c0_10] : memref<16x9xbf16, #tpu.memory_space<vmem>>, vector<16x9xbf16>
    %12 = vector.shape_cast %11 : vector<16x9xbf16> to vector<1x16x9xbf16>
    %13 = vector.shape_cast %12 : vector<1x16x9xbf16> to vector<1x16x9xbf16>
    %14 = vector.broadcast %13 : vector<1x16x9xbf16> to vector<2x16x9xbf16>
    "tpu.trace_start"() <{level = 10 : i32, message = "bcl,blf->bcf"}> : () -> ()
    %cst = arith.constant dense<0.000000e+00> : vector<2x7x9xf32>
    %15 = tpu.matmul %6, %10, %cst {dimension_numbers = #tpu.dot_dimension_numbers<[2], [1], [1], [2], [0, 0, 0, 1, 1, 2], [0], [0]>} : vector<2x7x16xbf16>, vector<2x16x9xbf16>, vector<2x7x9xf32> -> vector<2x7x9xf32>
    %cst_11 = arith.constant dense<0.000000e+00> : vector<2x7x9xf32>
    %16 = tpu.matmul %6, %14, %cst_11 {dimension_numbers = #tpu.dot_dimension_numbers<[2], [1], [1], [2], [0, 0, 0, 1, 1, 2], [0], [0]>} : vector<2x7x16xbf16>, vector<2x16x9xbf16>, vector<2x7x9xf32> -> vector<2x7x9xf32>
    "tpu.trace_stop"() : () -> ()
    %17 = tpu.concatenate %15, %16 in 1 : vector<2x7x9xf32>, vector<2x7x9xf32> -> vector<2x14x9xf32>
    %c0_12 = arith.constant 0 : index
    %c0_13 = arith.constant 0 : index
    %18 = vector.load %arg7[%c0_12, %c0_13] : memref<2x9xf32, #tpu.memory_space<vmem>>, vector<2x9xf32>
    %19 = vector.shape_cast %18 : vector<2x9xf32> to vector<1x2x9xf32>
    %20 = vector.shape_cast %19 : vector<1x2x9xf32> to vector<1x2x9xf32>
    %21 = vector.broadcast %20 : vector<1x2x9xf32> to vector<2x2x9xf32>
    %22 = tpu.concatenate %17, %21 in 1 : vector<2x14x9xf32>, vector<2x2x9xf32> -> vector<2x16x9xf32>
    %c0_14 = arith.constant 0 : index
    %c0_15 = arith.constant 0 : index
    %23 = vector.load %arg14[%c0_14, %c0_15] : memref<16x48xbf16, #tpu.memory_space<vmem>>, vector<16x48xbf16>
    %c0_16 = arith.constant 0 : index
    %c0_17 = arith.constant 0 : index
    %c0_18 = arith.constant 0 : index
    %24 = vector.load %arg15[%c0_16, %c0_17, %c0_18] : memref<1x16x1xf32, #tpu.memory_space<vmem>>, vector<1x16x1xf32>
    %cst_19 = arith.constant 0.000000e+00 : f32
    %25 = vector.broadcast %cst_19 : f32 to vector<2x16x1xf32>
    %26 = vector.extract_strided_slice %22 {offsets = [0, 0, 0], sizes = [2, 16, 8], strides = [1, 1, 1]} : vector<2x16x9xf32> to vector<2x16x8xf32>
    %27 = tpu.concatenate %25, %26 in 2 : vector<2x16x1xf32>, vector<2x16x8xf32> -> vector<2x16x9xf32>
    %cst_20 = arith.constant 0.000000e+00 : f32
    %28 = vector.broadcast %cst_20 : f32 to vector<2x16x1xf32>
    %29 = vector.extract_strided_slice %22 {offsets = [0, 0, 1], sizes = [2, 16, 8], strides = [1, 1, 1]} : vector<2x16x9xf32> to vector<2x16x8xf32>
    %30 = tpu.concatenate %29, %28 in 2 : vector<2x16x8xf32>, vector<2x16x1xf32> -> vector<2x16x9xf32>
    %31 = tpu.concatenate %27, %22, %30 in 1 : vector<2x16x9xf32>, vector<2x16x9xf32>, vector<2x16x9xf32> -> vector<2x48x9xf32>
    %32 = vector.shape_cast %23 : vector<16x48xbf16> to vector<1x16x48xbf16>
    %33 = vector.shape_cast %32 : vector<1x16x48xbf16> to vector<1x16x48xbf16>
    %34 = vector.broadcast %33 : vector<1x16x48xbf16> to vector<2x16x48xbf16>
    %35 = arith.truncf %31 : vector<2x48x9xf32> to vector<2x48x9xbf16>
    "tpu.trace_start"() <{level = 10 : i32, message = "bom,bml->bol"}> : () -> ()
    %cst_21 = arith.constant dense<0.000000e+00> : vector<2x16x9xf32>
    %36 = tpu.matmul %34, %35, %cst_21 {dimension_numbers = #tpu.dot_dimension_numbers<[2], [1], [1], [2], [0, 0, 0, 1, 1, 2], [0], [0]>} : vector<2x16x48xbf16>, vector<2x48x9xbf16>, vector<2x16x9xf32> -> vector<2x16x9xf32>
    "tpu.trace_stop"() : () -> ()
    %37 = vector.broadcast %24 : vector<1x16x1xf32> to vector<2x16x9xf32>
    %38 = arith.addf %36, %37 : vector<2x16x9xf32>
    %cst_22 = arith.constant dense<0.000000e+00> : vector<16xf32>
    %39 = vector.multi_reduction <add>, %38, %cst_22 [0, 2] : vector<2x16x9xf32> to vector<16xf32>
    %40 = vector.shape_cast %39 : vector<16xf32> to vector<1x16x1xf32>
    %cst_23 = arith.constant 1.800000e+01 : f32
    %41 = vector.broadcast %cst_23 : f32 to vector<1x16x1xf32>
    %42 = arith.divf %40, %41 : vector<1x16x1xf32>
    %43 = vector.broadcast %42 : vector<1x16x1xf32> to vector<2x16x9xf32>
    %44 = arith.subf %38, %43 : vector<2x16x9xf32>
    %45 = arith.mulf %44, %44 : vector<2x16x9xf32>
    %cst_24 = arith.constant dense<0.000000e+00> : vector<16xf32>
    %46 = vector.multi_reduction <add>, %45, %cst_24 [0, 2] : vector<2x16x9xf32> to vector<16xf32>
    %47 = vector.shape_cast %46 : vector<16xf32> to vector<1x16x1xf32>
    %cst_25 = arith.constant 1.800000e+01 : f32
    %48 = vector.broadcast %cst_25 : f32 to vector<1x16x1xf32>
    %49 = arith.divf %47, %48 : vector<1x16x1xf32>
    %50 = vector.broadcast %42 : vector<1x16x1xf32> to vector<2x16x9xf32>
    %51 = arith.subf %38, %50 : vector<2x16x9xf32>
    %cst_26 = arith.constant 9.99999974E-6 : f32
    %52 = vector.broadcast %cst_26 : f32 to vector<1x16x1xf32>
    %53 = arith.addf %49, %52 : vector<1x16x1xf32>
    %54 = math.rsqrt %53 : vector<1x16x1xf32>
    %55 = vector.broadcast %54 : vector<1x16x1xf32> to vector<2x16x9xf32>
    %56 = arith.mulf %51, %55 : vector<2x16x9xf32>
    %cst_27 = arith.constant 0.000000e+00 : f32
    %57 = vector.broadcast %cst_27 : f32 to vector<2x16x9xf32>
    %58 = arith.cmpf oge, %56, %57 : vector<2x16x9xf32>
    %cst_28 = arith.constant 0.00999999977 : f32
    %59 = vector.broadcast %cst_28 : f32 to vector<2x16x9xf32>
    %60 = arith.mulf %59, %56 : vector<2x16x9xf32>
    %61 = arith.select %58, %56, %60 : vector<2x16x9xi1>, vector<2x16x9xf32>
    %62 = tpu.concatenate %61, %21 in 1 : vector<2x16x9xf32>, vector<2x2x9xf32> -> vector<2x18x9xf32>
    %c0_29 = arith.constant 0 : index
    %c0_30 = arith.constant 0 : index
    %63 = vector.load %arg16[%c0_29, %c0_30] : memref<16x54xbf16, #tpu.memory_space<vmem>>, vector<16x54xbf16>
    %c0_31 = arith.constant 0 : index
    %c0_32 = arith.constant 0 : index
    %c0_33 = arith.constant 0 : index
    %64 = vector.load %arg17[%c0_31, %c0_32, %c0_33] : memref<1x16x1xf32, #tpu.memory_space<vmem>>, vector<1x16x1xf32>
    %cst_34 = arith.constant 0.000000e+00 : f32
    %65 = vector.broadcast %cst_34 : f32 to vector<2x18x1xf32>
    %66 = vector.extract_strided_slice %62 {offsets = [0, 0, 0], sizes = [2, 18, 8], strides = [1, 1, 1]} : vector<2x18x9xf32> to vector<2x18x8xf32>
    %67 = tpu.concatenate %65, %66 in 2 : vector<2x18x1xf32>, vector<2x18x8xf32> -> vector<2x18x9xf32>
    %cst_35 = arith.constant 0.000000e+00 : f32
    %68 = vector.broadcast %cst_35 : f32 to vector<2x18x1xf32>
    %69 = vector.extract_strided_slice %62 {offsets = [0, 0, 1], sizes = [2, 18, 8], strides = [1, 1, 1]} : vector<2x18x9xf32> to vector<2x18x8xf32>
    %70 = tpu.concatenate %69, %68 in 2 : vector<2x18x8xf32>, vector<2x18x1xf32> -> vector<2x18x9xf32>
    %71 = tpu.concatenate %67, %62, %70 in 1 : vector<2x18x9xf32>, vector<2x18x9xf32>, vector<2x18x9xf32> -> vector<2x54x9xf32>
    %72 = vector.shape_cast %63 : vector<16x54xbf16> to vector<1x16x54xbf16>
    %73 = vector.shape_cast %72 : vector<1x16x54xbf16> to vector<1x16x54xbf16>
    %74 = vector.broadcast %73 : vector<1x16x54xbf16> to vector<2x16x54xbf16>
    %75 = arith.truncf %71 : vector<2x54x9xf32> to vector<2x54x9xbf16>
    "tpu.trace_start"() <{level = 10 : i32, message = "bom,bml->bol"}> : () -> ()
    %cst_36 = arith.constant dense<0.000000e+00> : vector<2x16x9xf32>
    %76 = tpu.matmul %74, %75, %cst_36 {dimension_numbers = #tpu.dot_dimension_numbers<[2], [1], [1], [2], [0, 0, 0, 1, 1, 2], [0], [0]>} : vector<2x16x54xbf16>, vector<2x54x9xbf16>, vector<2x16x9xf32> -> vector<2x16x9xf32>
    "tpu.trace_stop"() : () -> ()
    %77 = vector.broadcast %64 : vector<1x16x1xf32> to vector<2x16x9xf32>
    %78 = arith.addf %76, %77 : vector<2x16x9xf32>
    %cst_37 = arith.constant dense<0.000000e+00> : vector<16xf32>
    %79 = vector.multi_reduction <add>, %78, %cst_37 [0, 2] : vector<2x16x9xf32> to vector<16xf32>
    %80 = vector.shape_cast %79 : vector<16xf32> to vector<1x16x1xf32>
    %cst_38 = arith.constant 1.800000e+01 : f32
    %81 = vector.broadcast %cst_38 : f32 to vector<1x16x1xf32>
    %82 = arith.divf %80, %81 : vector<1x16x1xf32>
    %83 = vector.broadcast %82 : vector<1x16x1xf32> to vector<2x16x9xf32>
    %84 = arith.subf %78, %83 : vector<2x16x9xf32>
    %85 = arith.mulf %84, %84 : vector<2x16x9xf32>
    %cst_39 = arith.constant dense<0.000000e+00> : vector<16xf32>
    %86 = vector.multi_reduction <add>, %85, %cst_39 [0, 2] : vector<2x16x9xf32> to vector<16xf32>
    %87 = vector.shape_cast %86 : vector<16xf32> to vector<1x16x1xf32>
    %cst_40 = arith.constant 1.800000e+01 : f32
    %88 = vector.broadcast %cst_40 : f32 to vector<1x16x1xf32>
    %89 = arith.divf %87, %88 : vector<1x16x1xf32>
    %90 = vector.broadcast %82 : vector<1x16x1xf32> to vector<2x16x9xf32>
    %91 = arith.subf %78, %90 : vector<2x16x9xf32>
    %cst_41 = arith.constant 9.99999974E-6 : f32
    %92 = vector.broadcast %cst_41 : f32 to vector<1x16x1xf32>
    %93 = arith.addf %89, %92 : vector<1x16x1xf32>
    %94 = math.rsqrt %93 : vector<1x16x1xf32>
    %95 = vector.broadcast %94 : vector<1x16x1xf32> to vector<2x16x9xf32>
    %96 = arith.mulf %91, %95 : vector<2x16x9xf32>
    %cst_42 = arith.constant 0.000000e+00 : f32
    %97 = vector.broadcast %cst_42 : f32 to vector<2x16x9xf32>
    %98 = arith.cmpf oge, %96, %97 : vector<2x16x9xf32>
    %cst_43 = arith.constant 0.00999999977 : f32
    %99 = vector.broadcast %cst_43 : f32 to vector<2x16x9xf32>
    %100 = arith.mulf %99, %96 : vector<2x16x9xf32>
    %101 = arith.select %98, %96, %100 : vector<2x16x9xi1>, vector<2x16x9xf32>
    %102 = tpu.concatenate %101, %21 in 1 : vector<2x16x9xf32>, vector<2x2x9xf32> -> vector<2x18x9xf32>
    %c0_44 = arith.constant 0 : index
    %c0_45 = arith.constant 0 : index
    %103 = vector.load %arg18[%c0_44, %c0_45] : memref<4x54xbf16, #tpu.memory_space<vmem>>, vector<4x54xbf16>
    %c0_46 = arith.constant 0 : index
    %c0_47 = arith.constant 0 : index
    %c0_48 = arith.constant 0 : index
    %104 = vector.load %arg19[%c0_46, %c0_47, %c0_48] : memref<1x4x1xf32, #tpu.memory_space<vmem>>, vector<1x4x1xf32>
    %cst_49 = arith.constant 0.000000e+00 : f32
    %105 = vector.broadcast %cst_49 : f32 to vector<2x18x1xf32>
    %106 = vector.extract_strided_slice %102 {offsets = [0, 0, 0], sizes = [2, 18, 8], strides = [1, 1, 1]} : vector<2x18x9xf32> to vector<2x18x8xf32>
    %107 = tpu.concatenate %105, %106 in 2 : vector<2x18x1xf32>, vector<2x18x8xf32> -> vector<2x18x9xf32>
    %cst_50 = arith.constant 0.000000e+00 : f32
    %108 = vector.broadcast %cst_50 : f32 to vector<2x18x1xf32>
    %109 = vector.extract_strided_slice %102 {offsets = [0, 0, 1], sizes = [2, 18, 8], strides = [1, 1, 1]} : vector<2x18x9xf32> to vector<2x18x8xf32>
    %110 = tpu.concatenate %109, %108 in 2 : vector<2x18x8xf32>, vector<2x18x1xf32> -> vector<2x18x9xf32>
    %111 = tpu.concatenate %107, %102, %110 in 1 : vector<2x18x9xf32>, vector<2x18x9xf32>, vector<2x18x9xf32> -> vector<2x54x9xf32>
    %112 = vector.shape_cast %103 : vector<4x54xbf16> to vector<1x4x54xbf16>
    %113 = vector.shape_cast %112 : vector<1x4x54xbf16> to vector<1x4x54xbf16>
    %114 = vector.broadcast %113 : vector<1x4x54xbf16> to vector<2x4x54xbf16>
    %115 = arith.truncf %111 : vector<2x54x9xf32> to vector<2x54x9xbf16>
    "tpu.trace_start"() <{level = 10 : i32, message = "bom,bml->bol"}> : () -> ()
    %cst_51 = arith.constant dense<0.000000e+00> : vector<2x4x9xf32>
    %116 = tpu.matmul %114, %115, %cst_51 {dimension_numbers = #tpu.dot_dimension_numbers<[2], [1], [1], [2], [0, 0, 0, 1, 1, 2], [0], [0]>} : vector<2x4x54xbf16>, vector<2x54x9xbf16>, vector<2x4x9xf32> -> vector<2x4x9xf32>
    "tpu.trace_stop"() : () -> ()
    %117 = vector.broadcast %104 : vector<1x4x1xf32> to vector<2x4x9xf32>
    %118 = arith.addf %116, %117 : vector<2x4x9xf32>
    %c0_52 = arith.constant 0 : index
    %c0_53 = arith.constant 0 : index
    %119 = vector.load %arg5[%c0_52, %c0_53] : memref<9x16xbf16, #tpu.memory_space<vmem>>, vector<9x16xbf16>
    %120 = vector.shape_cast %119 : vector<9x16xbf16> to vector<1x9x16xbf16>
    %121 = vector.shape_cast %120 : vector<1x9x16xbf16> to vector<1x9x16xbf16>
    %122 = vector.broadcast %121 : vector<1x9x16xbf16> to vector<2x9x16xbf16>
    %c0_54 = arith.constant 0 : index
    %c0_55 = arith.constant 0 : index
    %123 = vector.load %arg6[%c0_54, %c0_55] : memref<9x16xbf16, #tpu.memory_space<vmem>>, vector<9x16xbf16>
    %124 = vector.shape_cast %123 : vector<9x16xbf16> to vector<1x9x16xbf16>
    %125 = vector.shape_cast %124 : vector<1x9x16xbf16> to vector<1x9x16xbf16>
    %126 = vector.broadcast %125 : vector<1x9x16xbf16> to vector<2x9x16xbf16>
    %127 = vector.extract_strided_slice %118 {offsets = [0, 0, 0], sizes = [2, 2, 9], strides = [1, 1, 1]} : vector<2x4x9xf32> to vector<2x2x9xf32>
    %128 = arith.truncf %127 : vector<2x2x9xf32> to vector<2x2x9xbf16>
    %129 = vector.extract_strided_slice %118 {offsets = [0, 2, 0], sizes = [2, 2, 9], strides = [1, 1, 1]} : vector<2x4x9xf32> to vector<2x2x9xf32>
    %130 = arith.truncf %129 : vector<2x2x9xf32> to vector<2x2x9xbf16>
    "tpu.trace_start"() <{level = 10 : i32, message = "bcf,bfl->bcl"}> : () -> ()
    %cst_56 = arith.constant dense<0.000000e+00> : vector<2x2x16xf32>
    %131 = tpu.matmul %128, %122, %cst_56 {dimension_numbers = #tpu.dot_dimension_numbers<[2], [1], [1], [2], [0, 0, 0, 1, 1, 2], [0], [0]>} : vector<2x2x9xbf16>, vector<2x9x16xbf16>, vector<2x2x16xf32> -> vector<2x2x16xf32>
    %cst_57 = arith.constant dense<0.000000e+00> : vector<2x2x16xf32>
    %132 = tpu.matmul %130, %126, %cst_57 {dimension_numbers = #tpu.dot_dimension_numbers<[2], [1], [1], [2], [0, 0, 0, 1, 1, 2], [0], [0]>} : vector<2x2x9xbf16>, vector<2x9x16xbf16>, vector<2x2x16xf32> -> vector<2x2x16xf32>
    "tpu.trace_stop"() : () -> ()
    %133 = arith.addf %131, %132 : vector<2x2x16xf32>
    %c0_58 = arith.constant 0 : index
    %c0_59 = arith.constant 0 : index
    %134 = vector.load %arg8[%c0_58, %c0_59] : memref<8x21xbf16, #tpu.memory_space<vmem>>, vector<8x21xbf16>
    %c0_60 = arith.constant 0 : index
    %c0_61 = arith.constant 0 : index
    %c0_62 = arith.constant 0 : index
    %135 = vector.load %arg9[%c0_60, %c0_61, %c0_62] : memref<1x8x1xf32, #tpu.memory_space<vmem>>, vector<1x8x1xf32>
    %136 = vector.extract_strided_slice %5 {offsets = [0, 0, 15], sizes = [2, 7, 1], strides = [1, 1, 1]} : vector<2x7x16xf32> to vector<2x7x1xf32>
    %137 = vector.extract_strided_slice %5 {offsets = [0, 0, 0], sizes = [2, 7, 15], strides = [1, 1, 1]} : vector<2x7x16xf32> to vector<2x7x15xf32>
    %138 = tpu.concatenate %136, %137 in 2 : vector<2x7x1xf32>, vector<2x7x15xf32> -> vector<2x7x16xf32>
    %139 = vector.extract_strided_slice %5 {offsets = [0, 0, 1], sizes = [2, 7, 15], strides = [1, 1, 1]} : vector<2x7x16xf32> to vector<2x7x15xf32>
    %140 = vector.extract_strided_slice %5 {offsets = [0, 0, 0], sizes = [2, 7, 1], strides = [1, 1, 1]} : vector<2x7x16xf32> to vector<2x7x1xf32>
    %141 = tpu.concatenate %139, %140 in 2 : vector<2x7x15xf32>, vector<2x7x1xf32> -> vector<2x7x16xf32>
    %142 = tpu.concatenate %138, %5, %141 in 1 : vector<2x7x16xf32>, vector<2x7x16xf32>, vector<2x7x16xf32> -> vector<2x21x16xf32>
    %143 = vector.shape_cast %134 : vector<8x21xbf16> to vector<1x8x21xbf16>
    %144 = vector.shape_cast %143 : vector<1x8x21xbf16> to vector<1x8x21xbf16>
    %145 = vector.broadcast %144 : vector<1x8x21xbf16> to vector<2x8x21xbf16>
    %146 = arith.truncf %142 : vector<2x21x16xf32> to vector<2x21x16xbf16>
    "tpu.trace_start"() <{level = 10 : i32, message = "bom,bml->bol"}> : () -> ()
    %cst_63 = arith.constant dense<0.000000e+00> : vector<2x8x16xf32>
    %147 = tpu.matmul %145, %146, %cst_63 {dimension_numbers = #tpu.dot_dimension_numbers<[2], [1], [1], [2], [0, 0, 0, 1, 1, 2], [0], [0]>} : vector<2x8x21xbf16>, vector<2x21x16xbf16>, vector<2x8x16xf32> -> vector<2x8x16xf32>
    "tpu.trace_stop"() : () -> ()
    %148 = vector.broadcast %135 : vector<1x8x1xf32> to vector<2x8x16xf32>
    %149 = arith.addf %147, %148 : vector<2x8x16xf32>
    %cst_64 = arith.constant dense<0.000000e+00> : vector<8xf32>
    %150 = vector.multi_reduction <add>, %149, %cst_64 [0, 2] : vector<2x8x16xf32> to vector<8xf32>
    %151 = vector.shape_cast %150 : vector<8xf32> to vector<1x8x1xf32>
    %cst_65 = arith.constant 3.200000e+01 : f32
    %152 = vector.broadcast %cst_65 : f32 to vector<1x8x1xf32>
    %153 = arith.divf %151, %152 : vector<1x8x1xf32>
    %154 = vector.broadcast %153 : vector<1x8x1xf32> to vector<2x8x16xf32>
    %155 = arith.subf %149, %154 : vector<2x8x16xf32>
    %156 = arith.mulf %155, %155 : vector<2x8x16xf32>
    %cst_66 = arith.constant dense<0.000000e+00> : vector<8xf32>
    %157 = vector.multi_reduction <add>, %156, %cst_66 [0, 2] : vector<2x8x16xf32> to vector<8xf32>
    %158 = vector.shape_cast %157 : vector<8xf32> to vector<1x8x1xf32>
    %cst_67 = arith.constant 3.200000e+01 : f32
    %159 = vector.broadcast %cst_67 : f32 to vector<1x8x1xf32>
    %160 = arith.divf %158, %159 : vector<1x8x1xf32>
    %161 = vector.broadcast %153 : vector<1x8x1xf32> to vector<2x8x16xf32>
    %162 = arith.subf %149, %161 : vector<2x8x16xf32>
    %cst_68 = arith.constant 9.99999974E-6 : f32
    %163 = vector.broadcast %cst_68 : f32 to vector<1x8x1xf32>
    %164 = arith.addf %160, %163 : vector<1x8x1xf32>
    %165 = math.rsqrt %164 : vector<1x8x1xf32>
    %166 = vector.broadcast %165 : vector<1x8x1xf32> to vector<2x8x16xf32>
    %167 = arith.mulf %162, %166 : vector<2x8x16xf32>
    %cst_69 = arith.constant 0.000000e+00 : f32
    %168 = vector.broadcast %cst_69 : f32 to vector<2x8x16xf32>
    %169 = arith.cmpf oge, %167, %168 : vector<2x8x16xf32>
    %cst_70 = arith.constant 0.00999999977 : f32
    %170 = vector.broadcast %cst_70 : f32 to vector<2x8x16xf32>
    %171 = arith.mulf %170, %167 : vector<2x8x16xf32>
    %172 = arith.select %169, %167, %171 : vector<2x8x16xi1>, vector<2x8x16xf32>
    %c0_71 = arith.constant 0 : index
    %c0_72 = arith.constant 0 : index
    %173 = vector.load %arg10[%c0_71, %c0_72] : memref<8x24xbf16, #tpu.memory_space<vmem>>, vector<8x24xbf16>
    %c0_73 = arith.constant 0 : index
    %c0_74 = arith.constant 0 : index
    %c0_75 = arith.constant 0 : index
    %174 = vector.load %arg11[%c0_73, %c0_74, %c0_75] : memref<1x8x1xf32, #tpu.memory_space<vmem>>, vector<1x8x1xf32>
    %175 = vector.extract_strided_slice %172 {offsets = [0, 0, 15], sizes = [2, 8, 1], strides = [1, 1, 1]} : vector<2x8x16xf32> to vector<2x8x1xf32>
    %176 = vector.extract_strided_slice %172 {offsets = [0, 0, 0], sizes = [2, 8, 15], strides = [1, 1, 1]} : vector<2x8x16xf32> to vector<2x8x15xf32>
    %177 = tpu.concatenate %175, %176 in 2 : vector<2x8x1xf32>, vector<2x8x15xf32> -> vector<2x8x16xf32>
    %178 = vector.extract_strided_slice %172 {offsets = [0, 0, 1], sizes = [2, 8, 15], strides = [1, 1, 1]} : vector<2x8x16xf32> to vector<2x8x15xf32>
    %179 = vector.extract_strided_slice %172 {offsets = [0, 0, 0], sizes = [2, 8, 1], strides = [1, 1, 1]} : vector<2x8x16xf32> to vector<2x8x1xf32>
    %180 = tpu.concatenate %178, %179 in 2 : vector<2x8x15xf32>, vector<2x8x1xf32> -> vector<2x8x16xf32>
    %181 = tpu.concatenate %177, %172, %180 in 1 : vector<2x8x16xf32>, vector<2x8x16xf32>, vector<2x8x16xf32> -> vector<2x24x16xf32>
    %182 = vector.shape_cast %173 : vector<8x24xbf16> to vector<1x8x24xbf16>
    %183 = vector.shape_cast %182 : vector<1x8x24xbf16> to vector<1x8x24xbf16>
    %184 = vector.broadcast %183 : vector<1x8x24xbf16> to vector<2x8x24xbf16>
    %185 = arith.truncf %181 : vector<2x24x16xf32> to vector<2x24x16xbf16>
    "tpu.trace_start"() <{level = 10 : i32, message = "bom,bml->bol"}> : () -> ()
    %cst_76 = arith.constant dense<0.000000e+00> : vector<2x8x16xf32>
    %186 = tpu.matmul %184, %185, %cst_76 {dimension_numbers = #tpu.dot_dimension_numbers<[2], [1], [1], [2], [0, 0, 0, 1, 1, 2], [0], [0]>} : vector<2x8x24xbf16>, vector<2x24x16xbf16>, vector<2x8x16xf32> -> vector<2x8x16xf32>
    "tpu.trace_stop"() : () -> ()
    %187 = vector.broadcast %174 : vector<1x8x1xf32> to vector<2x8x16xf32>
    %188 = arith.addf %186, %187 : vector<2x8x16xf32>
    %cst_77 = arith.constant dense<0.000000e+00> : vector<8xf32>
    %189 = vector.multi_reduction <add>, %188, %cst_77 [0, 2] : vector<2x8x16xf32> to vector<8xf32>
    %190 = vector.shape_cast %189 : vector<8xf32> to vector<1x8x1xf32>
    %cst_78 = arith.constant 3.200000e+01 : f32
    %191 = vector.broadcast %cst_78 : f32 to vector<1x8x1xf32>
    %192 = arith.divf %190, %191 : vector<1x8x1xf32>
    %193 = vector.broadcast %192 : vector<1x8x1xf32> to vector<2x8x16xf32>
    %194 = arith.subf %188, %193 : vector<2x8x16xf32>
    %195 = arith.mulf %194, %194 : vector<2x8x16xf32>
    %cst_79 = arith.constant dense<0.000000e+00> : vector<8xf32>
    %196 = vector.multi_reduction <add>, %195, %cst_79 [0, 2] : vector<2x8x16xf32> to vector<8xf32>
    %197 = vector.shape_cast %196 : vector<8xf32> to vector<1x8x1xf32>
    %cst_80 = arith.constant 3.200000e+01 : f32
    %198 = vector.broadcast %cst_80 : f32 to vector<1x8x1xf32>
    %199 = arith.divf %197, %198 : vector<1x8x1xf32>
    %200 = vector.broadcast %192 : vector<1x8x1xf32> to vector<2x8x16xf32>
    %201 = arith.subf %188, %200 : vector<2x8x16xf32>
    %cst_81 = arith.constant 9.99999974E-6 : f32
    %202 = vector.broadcast %cst_81 : f32 to vector<1x8x1xf32>
    %203 = arith.addf %199, %202 : vector<1x8x1xf32>
    %204 = math.rsqrt %203 : vector<1x8x1xf32>
    %205 = vector.broadcast %204 : vector<1x8x1xf32> to vector<2x8x16xf32>
    %206 = arith.mulf %201, %205 : vector<2x8x16xf32>
    %cst_82 = arith.constant 0.000000e+00 : f32
    %207 = vector.broadcast %cst_82 : f32 to vector<2x8x16xf32>
    %208 = arith.cmpf oge, %206, %207 : vector<2x8x16xf32>
    %cst_83 = arith.constant 0.00999999977 : f32
    %209 = vector.broadcast %cst_83 : f32 to vector<2x8x16xf32>
    %210 = arith.mulf %209, %206 : vector<2x8x16xf32>
    %211 = arith.select %208, %206, %210 : vector<2x8x16xi1>, vector<2x8x16xf32>
    %c0_84 = arith.constant 0 : index
    %c0_85 = arith.constant 0 : index
    %212 = vector.load %arg12[%c0_84, %c0_85] : memref<2x24xbf16, #tpu.memory_space<vmem>>, vector<2x24xbf16>
    %c0_86 = arith.constant 0 : index
    %c0_87 = arith.constant 0 : index
    %c0_88 = arith.constant 0 : index
    %213 = vector.load %arg13[%c0_86, %c0_87, %c0_88] : memref<1x2x1xf32, #tpu.memory_space<vmem>>, vector<1x2x1xf32>
    %214 = vector.extract_strided_slice %211 {offsets = [0, 0, 15], sizes = [2, 8, 1], strides = [1, 1, 1]} : vector<2x8x16xf32> to vector<2x8x1xf32>
    %215 = vector.extract_strided_slice %211 {offsets = [0, 0, 0], sizes = [2, 8, 15], strides = [1, 1, 1]} : vector<2x8x16xf32> to vector<2x8x15xf32>
    %216 = tpu.concatenate %214, %215 in 2 : vector<2x8x1xf32>, vector<2x8x15xf32> -> vector<2x8x16xf32>
    %217 = vector.extract_strided_slice %211 {offsets = [0, 0, 1], sizes = [2, 8, 15], strides = [1, 1, 1]} : vector<2x8x16xf32> to vector<2x8x15xf32>
    %218 = vector.extract_strided_slice %211 {offsets = [0, 0, 0], sizes = [2, 8, 1], strides = [1, 1, 1]} : vector<2x8x16xf32> to vector<2x8x1xf32>
    %219 = tpu.concatenate %217, %218 in 2 : vector<2x8x15xf32>, vector<2x8x1xf32> -> vector<2x8x16xf32>
    %220 = tpu.concatenate %216, %211, %219 in 1 : vector<2x8x16xf32>, vector<2x8x16xf32>, vector<2x8x16xf32> -> vector<2x24x16xf32>
    %221 = vector.shape_cast %212 : vector<2x24xbf16> to vector<1x2x24xbf16>
    %222 = vector.shape_cast %221 : vector<1x2x24xbf16> to vector<1x2x24xbf16>
    %223 = vector.broadcast %222 : vector<1x2x24xbf16> to vector<2x2x24xbf16>
    %224 = arith.truncf %220 : vector<2x24x16xf32> to vector<2x24x16xbf16>
    "tpu.trace_start"() <{level = 10 : i32, message = "bom,bml->bol"}> : () -> ()
    %cst_89 = arith.constant dense<0.000000e+00> : vector<2x2x16xf32>
    %225 = tpu.matmul %223, %224, %cst_89 {dimension_numbers = #tpu.dot_dimension_numbers<[2], [1], [1], [2], [0, 0, 0, 1, 1, 2], [0], [0]>} : vector<2x2x24xbf16>, vector<2x24x16xbf16>, vector<2x2x16xf32> -> vector<2x2x16xf32>
    "tpu.trace_stop"() : () -> ()
    %226 = vector.broadcast %213 : vector<1x2x1xf32> to vector<2x2x16xf32>
    %227 = arith.addf %225, %226 : vector<2x2x16xf32>
    %228 = vector.extract_strided_slice %0 {offsets = [0, 0, 0], sizes = [2, 2, 16], strides = [1, 1, 1]} : vector<2x7x16xf32> to vector<2x2x16xf32>
    %229 = arith.addf %228, %133 : vector<2x2x16xf32>
    %230 = arith.addf %229, %227 : vector<2x2x16xf32>
    %c0_90 = arith.constant 0 : index
    %c0_91 = arith.constant 0 : index
    %c0_92 = arith.constant 0 : index
    %231 = vector.load %arg20[%c0_90, %c0_91, %c0_92] : memref<2x2x16xf32, #tpu.memory_space<vmem>>, vector<2x2x16xf32>
    tpu.vector_store %arg20[%c0_90, %c0_91, %c0_92], %230 {strides = array<i32>} : memref<2x2x16xf32, #tpu.memory_space<vmem>>, vector<2x2x16xf32>,
    return
  }
}

</mosaic_0001>

<bundles_post_ra>
// kernel: refine_audio_forward.2
= control target key start
LH: loop header
LB: loop body
LE: loop exit
PB: predicated region body
PF: predicated region fallthrough
CT: control target
= control target key end

     0   :  { %8 = vsyncpa [#allocation3], 0  ;;  %s155_s12 = smov [#allocation2]   ;;  %s190_s0 = inlined_call_operand.vmem [shape: f32[2,6], index: 0, kind: input, shape index: {}]   ;;  %s191_s1 = inlined_call_operand.hbm [shape: f32[6,48], index: 1, kind: input, shape index: {}]   ;;  %s192_s2 = inlined_call_operand.vmem [shape: f32[1,48], index: 2, kind: input, shape index: {}]   ;;  %s193_s3 = inlined_call_operand.vmem [shape: f32[2,48], index: 3, kind: output, shape index: {}]  }
   0x1   :  { %s17_s13 = sshll.u32 %s155_s12, 4  ;;  %s18_s13 = int_to_ptr.vmem [resolvable:$true] %s17_s13 }
   0x2   :  { %s141_s14 = scalar_lea.vmem %s18_s13, 128  ;;  %p146_p1 = scmp.lt.s32.totalorder %s18_s13, %s18_s13 }
   0x3   :  { %p142_p0 = scmp.ne.s32.totalorder %s18_s13, %s141_s14  ;;  %p147_p2 = scmp.lt.s32.totalorder %s141_s14, %s141_s14 }
   0x5   :  { %p148_p3 = por %p147_p2, %p146_p1 }
   0x7   :  { %p149_p4 = pnand %p148_p3, %p142_p0 }
   0x9   :  { %152 = shalt.err (!%p149_p4)
}
   0xa   :  { %20 = dma.hbm_to_vmem [thread:$0]  %s191_s1, 128, %s18_s13, [#allocation3]  }
   0xb   :  { %153 = dma.done.wait [#allocation3], 128  }
   0xc   :  { %154 = vsyncadd [#allocation3], 4294967168  ;;  %v156_v0 = vmov 0.0   ;;  %vm157_vm0 = vmmov 0   ;;  %vm39_vm1 = vcmask 1045504   ;;  %vm35_vm2 = vcmask 48128  }
   0xd   :  { %125 = vmatprep.subr.mxu0 %v156_v0  ;;  %127 = vmatprep.mubr.msk.f32.mxu0 %vm157_vm0, %v156_v0  ;;  %v27_v1 = vld [vmem:[#allocation2] sm:$0x3f]  ;;  %vm113_vm3 = vcmask 386048  }
   0xe   :  { %v26_v2 = vld [vmem:[%s190_s0] sm:$0x3]  ;;  %126 = vmatpush3.msk.msra.mxu0 %vm39_vm1, %v27_v1 }
   0xf   :  { %128 = vmatmul.mubr.msk.f32.vlgmr.msra.gmra.mxu0 %vm35_vm2, %v26_v2  ;;  %v120_v3 = vld [vmem:[%s192_s2] ss:$0 sm:$0xff] }
  0xcf   :  { %v109_v4 = vpop.f32.mrf.mxu0 }
  0xd0   :  { %v110_v5 = vadd.f32 %v120_v3, %v109_v4 }
  0xd1   :  { %v129_v6 = vpop.f32.mrf.mxu0 }
  0xd2   :  { %114 = vst.msk [vmem:[%s193_s3] sm:$0x3] %vm113_vm3, %v110_v5 }
  0xd3   :  { %119 = vsyncpa [#allocation3], 1 }

// kernel: refine_audio_forward.3
= control target key start
LH: loop header
LB: loop body
LE: loop exit
PB: predicated region body
PF: predicated region fallthrough
CT: control target
= control target key end

     0   :  { %s2541_s0 = inlined_call_operand.<no memory space> [shape: f32[1,1], index: 0, kind: input, shape index: {}]   ;;  %s2542_s1 = inlined_call_operand.vmem [shape: f32[2,7,16], index: 1, kind: input, shape index: {}]   ;;  %s2543_s2 = inlined_call_operand.vmem [shape: f32[2,7,16], index: 2, kind: input, shape index: {}]   ;;  %s2544_s3 = inlined_call_operand.vmem [shape: bf16[16,9], index: 3, kind: input, shape index: {}]   ;;  %s2545_s4 = inlined_call_operand.vmem [shape: bf16[16,9], index: 4, kind: input, shape index: {}]   ;;  %s2546_s5 = inlined_call_operand.vmem [shape: bf16[9,16], index: 5, kind: input, shape index: {}]   ;;  %s2547_s6 = inlined_call_operand.vmem [shape: bf16[9,16], index: 6, kind: input, shape index: {}]   ;;  %s2548_s7 = inlined_call_operand.vmem [shape: f32[2,9], index: 7, kind: input, shape index: {}]   ;;  %s2549_s8 = inlined_call_operand.vmem [shape: bf16[8,21], index: 8, kind: input, shape index: {}]   ;;  %s2550_s9 = inlined_call_operand.vmem [shape: f32[1,8,1], index: 9, kind: input, shape index: {}]   ;;  %s2551_s10 = inlined_call_operand.vmem [shape: bf16[8,24], index: 10, kind: input, shape index: {}]   ;;  %s2552_s11 = inlined_call_operand.vmem [shape: f32[1,8,1], index: 11, kind: input, shape index: {}]   ;;  %s2553_s12 = inlined_call_operand.vmem [shape: bf16[2,24], index: 12, kind: input, shape index: {}]   ;;  %s2554_s13 = inlined_call_operand.vmem [shape: f32[1,2,1], index: 13, kind: input, shape index: {}]   ;;  %s2555_s14 = inlined_call_operand.vmem [shape: bf16[16,48], index: 14, kind: input, shape index: {}]   ;;  %s2556_s15 = inlined_call_operand.vmem [shape: f32[1,16,1], index: 15, kind: input, shape index: {}]   ;;  %s2557_s16 = inlined_call_operand.vmem [shape: bf16[16,54], index: 16, kind: input, shape index: {}]   ;;  %s2558_s17 = inlined_call_operand.vmem [shape: f32[1,16,1], index: 17, kind: input, shape index: {}]   ;;  %s2559_s18 = inlined_call_operand.vmem [shape: bf16[4,54], index: 18, kind: input, shape index: {}]   ;;  %s2560_s19 = inlined_call_operand.vmem [shape: f32[1,4,1], index: 19, kind: input, shape index: {}]   ;;  %s2561_s20 = inlined_call_operand.hbm [shape: f32[2,2,16], index: 20, kind: output, shape index: {}]  }
   0x1   :  { %2564 = sst [smem:[#allocation6_spill]] %s2541_s0 }
   0x2   :  { %2565 = sst [smem:[#allocation7_spill]] %s2542_s1 }
   0x3   :  { %2566 = sst [smem:[#allocation8_spill]] %s2543_s2 }
   0x4   :  { %2567 = sst [smem:[#allocation9_spill]] %s2544_s3 }
   0x5   :  { %2568 = sst [smem:[#allocation10_spill]] %s2545_s4 }
   0x6   :  { %2569 = sst [smem:[#allocation11_spill]] %s2553_s12 }
   0x7   :  { %s2570_s23 = sld [smem:[#allocation9_spill]]  ;;  %v2064_v2 = vmov 0.0   ;;  %vm2065_vm0 = vmmov 0   ;;  %vm90_vm1 = vcmask 130048  }
   0x8   :  { %s2571_s12 = sld [smem:[#allocation6_spill]]  ;;  %1725 = vmatprep.subr.bf16.mxu0 %v2064_v2  ;;  %1731 = vmatprep.subr.bf16.mxu1 %v2064_v2 }
   0x9   :  { %s2572_s26 = sld [smem:[#allocation7_spill]]  ;;  %1727 = vmatprep.mubr.msk.bf16.mxu0 %vm2065_vm0, %v2064_v2  ;;  %1733 = vmatprep.mubr.msk.bf16.mxu1 %vm2065_vm0, %v2064_v2 }
   0xa   :  { %s2573_s4 = sld [smem:[#allocation8_spill]] }
   0xb   :  { %s2574_s22 = sld [smem:[#allocation10_spill]] }
   0xd   :  { %v2022_v0 = vld [vmem:[%s2570_s23] sm:$0xff]  }
   0xe   :  { %v73_v1 = vstv %s2571_s12  ;;  %1726 = vmatpush3.bf16.msra.mxu0 %v2022_v0  ;;  %1732 = vmatpush3.bf16.msra.mxu1 %v2022_v0 }
   0xf   :  { %v68_v3 = vld [vmem:[%s2572_s26] sm:$0x7f]  ;;  %v69_v6 = vld [vmem:[%s2572_s26 + $0x8] sm:$0x7f]  ;;  %1737 = vmatprep.subr.bf16.mxu0 %v2064_v2  ;;  %1743 = vmatprep.subr.bf16.mxu1 %v2064_v2 }
  0x10   :  { %v71_v4 = vld [vmem:[%s2573_s4] sm:$0x7f]  ;;  %v72_v7 = vld [vmem:[%s2573_s4 + $0x8] sm:$0x7f] }
  0x11   :  { %v74_v5 = vmul.f32 %v73_v1, %v71_v4  ;;  %v75_v8 = vmul.f32 %v73_v1, %v72_v7  ;;  %v2023_v9 = vld [vmem:[%s2574_s22] sm:$0xff]  }
  0x13   :  { %v2207_v10 = vadd.f32 %v74_v5, %v68_v3  ;;  %v2211_v11 = vadd.f32 %v75_v8, %v69_v6 }
  0x15   :  { %v78_v12 = vpack.c.bf16 %v2207_v10, %v2207_v10 }
  0x16   :  { %26 = vsyncpa [#allocation4], 0  ;;  %v79_v13 = vpack.c.bf16 %v2211_v11, %v2211_v11  ;;  %v2234_v19 = vld [vmem:[%s2548_s7] sm:$0x3]  ;;  %vm269_vm2 = vcmask 1046528   ;;  %vm276_vm3 = vcmask 1045504  }
  0x17   :  { %1728 = vmatmul.mubr.msk.bf16.vlgmr.msra.gmra.mxu0 %vm90_vm1, %v78_v12  ;;  %v274_v23 = vrot.slane %v2234_v19, 2  ;;  %s2066_s7 = smov 1   ;;  %s2067_s2 = smov 127   ;;  %v281_v42 = vld [vmem:[%s2556_s15] sm:$0xff]  ;;  %v282_v43 = vld [vmem:[%s2556_s15 + $0x8] sm:$0xff]  ;;  %v2068_v44 = vmov 0  }
  0x18   :  { %1734 = vmatmul.mubr.msk.bf16.vlgmr.msra.gmra.mxu1 %vm90_vm1, %v79_v13  ;;  %1738 = vmatpush3.bf16.msra.mxu0 %v2023_v9  ;;  %vm316_vm4 = vcmask 64512   ;;  %vm299_vm6 = vcmask 7168   ;;  %v2024_v61 = vld [vmem:[%s2555_s14] sm:$0xff]   ;;  %vm342_vm9 = vcmask 392192   ;;  %vm428_vm10 = vcmask 72704   ;;  %s2069_s1 = smov 113  }
  0x19   :  { %1744 = vmatpush3.bf16.msra.mxu1 %v2023_v9  ;;  %1739 = vmatprep.mubr.msk.bf16.mxu0 %vm2065_vm0, %v2064_v2  ;;  %vm1608_vm5 = vmpackc.low %vm316_vm4, %vm316_vm4  ;;  %vm530_vm15 = vcmask 1041408   ;;  %s2070_s23 = smov 15   ;;  %v2026_v57 = vld [vmem:[%s2547_s6] sm:$0x1f]   ;;  %s2072_s14 = smov [#allocation3]  }
  0x1a   :  { %1745 = vmatprep.mubr.msk.bf16.mxu1 %vm2065_vm0, %v2064_v2  ;;  %1749 = vmatprep.subr.bf16.mxu0 %v2064_v2  ;;  %vm1611_vm7 = vmneg %vm299_vm6  ;;  %s1590_s29 = sshll.u32 %s2072_s14, 4  ;;  %s1591_s29 = int_to_ptr.vmem [resolvable:$true] %s1590_s29 }
  0x1b   :  { %1759 = vmatprep.subr.bf16.mxu1 %v2064_v2  ;;  %1921 = vset.pattern.permute.xlu1 %v2068_v44  ;;  %vm2257_vm8 = vmpackc.low %vm1611_vm7, %vm1611_vm7  ;;  %vm598_vm7 = vcmask 1042432   ;;  %p2047_p1 = scmp.lt.s32.totalorder %s1591_s29, %s1591_s29 }
  0x1c   :  { %1920 = vset.pattern.permute.xlu0 %v2068_v44 }
  0x1f   :  { %1740 = vmatmul.mubr.msk.bf16.vlgmr.msra.gmra.mxu0 %vm90_vm1, %v78_v12 }
  0x20   :  { %1746 = vmatmul.mubr.msk.bf16.vlgmr.msra.gmra.mxu1 %vm90_vm1, %v79_v13  ;;  %1755 = vmatprep.mubr.msk.bf16.mxu0 %vm2065_vm0, %v2064_v2 }
  0x21   :  { %1765 = vmatprep.mubr.msk.bf16.mxu1 %vm2065_vm0, %v2064_v2 }
  0xd7   :  { %v128_v14 = vpop.f32.mrf.mxu0 }
  0xd8   :  { %v171_v15 = vpop.f32.mrf.mxu1 }
  0xd9   :  { %v1729_v16 = vpop.f32.mrf.mxu0 }
  0xda   :  { %v1735_v17 = vpop.f32.mrf.mxu1 }
  0xdb   :  { %v131_v18 = vpop.f32.mrf.mxu0 }
  0xdc   :  { %v174_v20 = vpop.f32.mrf.mxu1 }
  0xdd   :  { %v1730_v21 = vpop.f32.mrf.mxu0 }
  0xde   :  { %v1736_v22 = vpop.f32.mrf.mxu1 }
  0xdf   :  { %v217_v24 = vpop.f32.mrf.mxu0 }
  0xe0   :  { %v265_v25 = vrot.slane %v217_v24, 1  ;;  %v257_v26 = vpop.f32.mrf.mxu1 }
  0xe1   :  { %v266_v27 = vrot.slane %v257_v26, 1  ;;  %v1741_v28 = vpop.f32.mrf.mxu0 }
  0xe2   :  { %v1747_v29 = vpop.f32.mrf.mxu1  ;;  %v270_v30 = vsel %vm269_vm2, %v128_v14, %v265_v25  ;;  %v277_v31 = vsel %vm276_vm3, %v265_v25, %v274_v23 }
  0xe3   :  { %v271_v32 = vsel %vm269_vm2, %v171_v15, %v266_v27  ;;  %v278_v33 = vsel %vm276_vm3, %v266_v27, %v274_v23  ;;  %v220_v34 = vpop.f32.mrf.mxu0  ;;  %v1910_v35 = vpack.i.bf16 %v277_v31, %v270_v30  ;;  %v322_v36 = vpack.c.bf16 %v277_v31, %v270_v30 }
  0xe4   :  { %v325_v37 = vpack.c.bf16 %v278_v33, %v271_v32  ;;  %v260_v38 = vpop.f32.mrf.mxu1  ;;  %v1915_v41 = vpack.i.bf16 %v278_v33, %v271_v32 }
  0xe5   :  { %1911 = vrot.lane.b32.xlu1 %v1910_v35, %s2066_s7  ;;  %v1742_v39 = vpop.f32.mrf.mxu0  ;;  %1901 = vrot.lane.b32.xlu0 %v1910_v35, %s2067_s2 }
  0xe6   :  { %v1748_v40 = vpop.f32.mrf.mxu1 }
  0xe9   :  { %1916 = vrot.lane.b32.xlu1 %v1915_v41, %s2066_s7  ;;  %1906 = vrot.lane.b32.xlu0 %v1915_v41, %s2067_s2 }
  0xed   :  { %329 = vperm.xlu1 %1921, %v281_v42   ;;  %334 = vperm.xlu0 %1920, %v282_v43  }
 0x157   :  { %v1902_v45 = vpop.permute.xlu0 %1901  ;;  %v1912_v48 = vpop.permute.xlu1 %1911 }
 0x158   :  { %v1904_v46 = vunpack.i.h.bf16 %v1902_v45  ;;  %v1903_v47 = vunpack.i.l.bf16 %v1902_v45  ;;  %v1914_v53 = vunpack.i.h.bf16 %v1912_v48  ;;  %v1913_v54 = vunpack.i.l.bf16 %v1912_v48 }
 0x15a   :  { %v1609_v49 = vpack.c.bf16 %v1904_v46, %v1903_v47  ;;  %v1614_v58 = vpack.c.bf16 %v1914_v53, %v1913_v54 }
 0x15b   :  { %v1907_v50 = vpop.permute.xlu0 %1906  ;;  %v1917_v56 = vpop.permute.xlu1 %1916 }
 0x15c   :  { %v1909_v51 = vunpack.i.h.bf16 %v1907_v50  ;;  %v1908_v52 = vunpack.i.l.bf16 %v1907_v50  ;;  %1750 = vmatpush3.bf16.msk.msra.mxu0 %vm1608_vm5, %v1609_v49  ;;  %v1919_v59 = vunpack.i.h.bf16 %v1917_v56  ;;  %v1918_v60 = vunpack.i.l.bf16 %v1917_v56 }
 0x15d   :  { %1751 = vmatprep.subr.bf16.mxu0 %v2064_v2 }
 0x15e   :  { %v1618_v55 = vpack.c.bf16 %v1909_v51, %v1908_v52  ;;  %v1623_v62 = vpack.c.bf16 %v1919_v59, %v1918_v60 }
 0x160   :  { %1752 = vmatpush3.bf16.msra.mxu0 %v322_v36  ;;  %1760 = vmatpush3.bf16.msk.msra.mxu1 %vm1608_vm5, %v1618_v55  ;;  %vm551_vm5 = vcmask 1043456  }
 0x161   :  { %1753 = vmatprep.subr.bf16.mxu0 %v2064_v2  ;;  %1761 = vmatprep.subr.bf16.mxu1 %v2064_v2 }
 0x164   :  { %1754 = vmatpush3.bf16.msk.msra.mxu0 %vm2257_vm8, %v1614_v58  ;;  %1762 = vmatpush3.bf16.msra.mxu1 %v325_v37 }
 0x165   :  { %1763 = vmatprep.subr.bf16.mxu1 %v2064_v2  ;;  %1769 = vmatprep.subr.bf16.mxu0 %v2064_v2 }
 0x167   :  { %1756 = vmatmul.mubr.msk.bf16.vlgmr.msra.gmra.mxu0 %vm342_vm9, %v2024_v61 }
 0x168   :  { %1764 = vmatpush3.bf16.msk.msra.mxu1 %vm2257_vm8, %v1623_v62  ;;  %1777 = vmatprep.mubr.msk.bf16.mxu0 %vm2065_vm0, %v2064_v2  ;;  %v330_v63 = vpop.permute.xlu1 %329  ;;  %v335_v4 = vpop.permute.xlu0 %334 }
 0x169   :  { %1781 = vmatprep.subr.bf16.mxu1 %v2064_v2 }
 0x16b   :  { %1766 = vmatmul.mubr.msk.bf16.vlgmr.msra.gmra.mxu1 %vm342_vm9, %v2024_v61  ;;  %vm594_vm9 = vcmask 441344  }
 0x16c   :  { %1789 = vmatprep.mubr.msk.bf16.mxu1 %vm2065_vm0, %v2064_v2 }
 0x227   :  { %v380_v0 = vpop.f32.mrf.mxu0 }
 0x228   :  { %v381_v1 = vadd.f32 %v380_v0, %v330_v63 }
 0x229   :  { %v1757_v3 = vpop.f32.mrf.mxu0 }
 0x22a   :  { %v429_v8 = vsel %vm428_vm10, %v381_v1, 0.0 }
 0x22b   :  { %v383_v5 = vpop.f32.mrf.mxu0  ;;  %v421_v6 = vpop.f32.mrf.mxu1 }
 0x22c   :  { %v422_v7 = vadd.f32 %v421_v6, %v330_v63  ;;  %v384_v13 = vadd.f32 %v383_v5, %v335_v4 }
 0x22d   :  { %v1758_v9 = vpop.f32.mrf.mxu0  ;;  %v1767_v12 = vpop.f32.mrf.mxu1 }
 0x22e   :  { %v430_v14 = vsel %vm428_vm10, %v422_v7, 0.0  ;;  %v434_v20 = vsel %vm428_vm10, %v384_v13, 0.0  ;;  %v485_v9 = vld [vmem:[%s2558_s17 + $0x8] sm:$0xff]  ;;  %v484_v12 = vld [vmem:[%s2558_s17] sm:$0xff] }
 0x22f   :  { %v424_v15 = vpop.f32.mrf.mxu1  ;;  %v431_v16 = vadd.f32 %v430_v14, %v429_v8 }
 0x230   :  { %v425_v17 = vadd.f32 %v424_v15, %v335_v4 }
 0x231   :  { %v1768_v18 = vpop.f32.mrf.mxu1  ;;  %432 = vadd.xlane.f32.xlu0 %v431_v16 }
 0x232   :  { %v435_v21 = vsel %vm428_vm10, %v425_v17, 0.0 }
 0x233   :  { %v436_v22 = vadd.f32 %v435_v21, %v434_v20 }
 0x235   :  { %437 = vadd.xlane.f32.xlu1 %v436_v22 }
 0x2ba   :  { %v433_v23 = vpop.xlane.xlu0 %432 }
 0x2bb   :  { %v440_v24 = vmul.f32 0.055555556, %v433_v23 }
 0x2bd   :  { %v442_v25 = vsub.f32 %v381_v1, %v440_v24  ;;  %v444_v26 = vsub.f32 %v422_v7, %v440_v24  ;;  %v2307_v24 = vrot.slane %v2234_v19, 6 }
 0x2be   :  { %v438_v27 = vpop.xlane.xlu1 %437 }
 0x2bf   :  { %v441_v28 = vmul.f32 0.055555556, %v438_v27  ;;  %v446_v29 = vmul.f32 %v442_v25, %v442_v25  ;;  %v448_v30 = vmul.f32 %v444_v26, %v444_v26 }
 0x2c1   :  { %v443_v31 = vsub.f32 %v384_v13, %v441_v28  ;;  %v445_v32 = vsub.f32 %v425_v17, %v441_v28  ;;  %v450_v33 = vsel %vm428_vm10, %v446_v29, 0.0  ;;  %v451_v34 = vsel %vm428_vm10, %v448_v30, 0.0 }
 0x2c2   :  { %v452_v35 = vadd.f32 %v451_v34, %v450_v33 }
 0x2c3   :  { %v447_v36 = vmul.f32 %v443_v31, %v443_v31  ;;  %v449_v37 = vmul.f32 %v445_v32, %v445_v32 }
 0x2c4   :  { %453 = vadd.xlane.f32.xlu1 %v452_v35 }
 0x2c5   :  { %v455_v38 = vsel %vm428_vm10, %v447_v36, 0.0  ;;  %v456_v39 = vsel %vm428_vm10, %v449_v37, 0.0 }
 0x2c6   :  { %v457_v40 = vadd.f32 %v456_v39, %v455_v38 }
 0x2c8   :  { %458 = vadd.xlane.f32.xlu0 %v457_v40 }
 0x34d   :  { %v454_v41 = vpop.xlane.xlu1 %453 }
 0x34e   :  { %v460_v42 = vmul.f32 0.055555556, %v454_v41 }
 0x350   :  { %v462_v43 = vadd.f32 1e-05, %v460_v42 }
 0x351   :  { %v459_v44 = vpop.xlane.xlu0 %458 }
 0x352   :  { %2028 = vrsqrt.f32 %v462_v43  ;;  %v461_v45 = vmul.f32 0.055555556, %v459_v44 }
 0x354   :  { %v463_v46 = vadd.f32 1e-05, %v461_v45 }
 0x356   :  { %2030 = vrsqrt.f32 %v463_v46 }
 0x35f   :  { %v2029_v47 = vpop.eup %2028 }
 0x360   :  { %v466_v48 = vmul.f32 %v2029_v47, %v442_v25  ;;  %v468_v49 = vmul.f32 %v2029_v47, %v444_v26 }
 0x362   :  { %vm470_vm11 = vcmp.ge.f32.partialorder %v466_v48, 0.0  ;;  %vm472_vm12 = vcmp.ge.f32.partialorder %v468_v49, 0.0  ;;  %v474_v50 = vmul.f32 0.01, %v466_v48  ;;  %v476_v51 = vmul.f32 0.01, %v468_v49 }
 0x363   :  { %v2031_v52 = vpop.eup %2030 }
 0x364   :  { %v469_v53 = vmul.f32 %v2031_v52, %v445_v32  ;;  %v467_v54 = vmul.f32 %v2031_v52, %v443_v31  ;;  %v478_v55 = vsel %vm470_vm11, %v466_v48, %v474_v50  ;;  %v480_v56 = vsel %vm472_vm12, %v468_v49, %v476_v51 }
 0x365   :  { %v536_v62 = vrot.slane %v480_v56, 6  ;;  %v531_v3 = vrot.slane %v478_v55, 6  ;;  %v1927_v4 = vpack.i.bf16 %v480_v56, %v478_v55  ;;  %v1932_v7 = vpack.i.bf16 %v478_v55, %v2234_v19 }
 0x366   :  { %vm473_vm13 = vcmp.ge.f32.partialorder %v469_v53, 0.0  ;;  %v477_v58 = vmul.f32 0.01, %v469_v53  ;;  %vm471_vm14 = vcmp.ge.f32.partialorder %v467_v54, 0.0  ;;  %v475_v59 = vmul.f32 0.01, %v467_v54 }
 0x368   :  { %v481_v60 = vsel %vm473_vm13, %v469_v53, %v477_v58  ;;  %v479_v61 = vsel %vm471_vm14, %v467_v54, %v475_v59 }
 0x369   :  { %518 = vrot.lane.b32.xlu1 %v481_v60, %s2067_s2  ;;  %v537_v63 = vrot.slane %v481_v60, 6  ;;  %v1922_v0 = vpack.i.bf16 %v2234_v19, %v479_v61  ;;  %v532_v1 = vrot.slane %v479_v61, 6  ;;  %v1937_v8 = vpack.i.bf16 %v480_v56, %v479_v61 }
 0x36b   :  { %1923 = vrot.lane.b32.xlu0 %v1922_v0, %s2067_s2  ;;  %v2287_v5 = vsel %vm530_vm15, %v531_v3, %v532_v1  ;;  %v2290_v6 = vsel %vm530_vm15, %v536_v62, %v537_v63  ;;  %v535_v40 = vsel %vm530_vm15, %v532_v1, %v2307_v24  ;;  %v539_v41 = vsel %vm530_vm15, %v537_v63, %v2307_v24 }
 0x36d   :  { %1928 = vrot.lane.b32.xlu1 %v1927_v4, %s2067_s2 }
 0x36f   :  { %1933 = vrot.lane.b32.xlu0 %v1932_v7, %s2066_s7 }
 0x371   :  { %1938 = vrot.lane.b32.xlu1 %v1937_v8, %s2066_s7 }
 0x373   :  { %498 = vrot.lane.b32.xlu0 %v481_v60, %s2066_s7  ;;  %v2025_v60 = vld [vmem:[%s2557_s16] sm:$0xff]   ;;  %s2042_s16 = scalar_lea.vmem %s1591_s29, 64 }
 0x374   :  { %p2043_p0 = scmp.ne.s32.totalorder %s1591_s29, %s2042_s16  ;;  %p2048_p2 = scmp.lt.s32.totalorder %s2042_s16, %s2042_s16 }
 0x375   :  { %586 = vperm.xlu1 %1921, %v485_v9  }
 0x376   :  { %p2049_p3 = por %p2048_p2, %p2047_p1 }
 0x377   :  { %581 = vperm.xlu0 %1920, %v484_v12  }
 0x378   :  { %p2050_p4 = pnand %p2049_p3, %p2043_p0 }
 0x3db   :  { %v519_v13 = vpop.permute.xlu1 %518 }
 0x3dc   :  { %v529_v15 = vsel %vm316_vm4, %v519_v13, 0.0 }
 0x3dd   :  { %v1924_v14 = vpop.permute.xlu0 %1923  ;;  %v558_v25 = vrot.slane %v529_v15, 4 }
 0x3de   :  { %v1926_v16 = vunpack.i.h.bf16 %v1924_v14  ;;  %v1925_v17 = vunpack.i.l.bf16 %v1924_v14 }
 0x3df   :  { %v1929_v18 = vpop.permute.xlu1 %1928 }
 0x3e0   :  { %v527_v20 = vsel %vm316_vm4, %v1926_v16, 0.0  ;;  %v526_v21 = vsel %vm316_vm4, %v1925_v17, 0.0  ;;  %v1931_v22 = vunpack.i.h.bf16 %v1929_v18  ;;  %v1930_v23 = vunpack.i.l.bf16 %v1929_v18 }
 0x3e1   :  { %v2309_v26 = vrot.slane %v527_v20, 4  ;;  %v553_v27 = vrot.slane %v526_v21, 4  ;;  %v1934_v28 = vpop.permute.xlu0 %1933 }
 0x3e2   :  { %v528_v29 = vsel %vm316_vm4, %v1931_v22, 0.0  ;;  %v525_v30 = vsel %vm316_vm4, %v1930_v23, 0.0  ;;  %v1935_v31 = vunpack.i.l.bf16 %v1934_v28  ;;  %v1936_v55 = vunpack.i.h.bf16 %v1934_v28 }
 0x3e3   :  { %v557_v32 = vrot.slane %v528_v29, 4  ;;  %v552_v33 = vrot.slane %v525_v30, 4  ;;  %v556_v34 = vsel %vm551_vm5, %v553_v27, %v2309_v26  ;;  %v560_v19 = vsel %vm551_vm5, %v558_v25, %v2309_v26  ;;  %v1939_v51 = vpop.permute.xlu1 %1938 }
 0x3e4   :  { %v2318_v35 = vsel %vm299_vm6, 0.0, %v1935_v31  ;;  %v574_v36 = vpack.c.bf16 %v556_v34, %v556_v34  ;;  %v578_v39 = vpack.c.bf16 %v560_v19, %v560_v19  ;;  %v1940_v53 = vunpack.i.l.bf16 %v1939_v51 }
 0x3e5   :  { %v567_v37 = vsel %vm530_vm15, %v2318_v35, %v531_v3  ;;  %v568_v38 = vsel %vm530_vm15, %v2318_v35, %v536_v62  ;;  %v554_v43 = vsel %vm551_vm5, %v552_v33, %v553_v27  ;;  %v569_v44 = vsel %vm551_vm5, %v535_v40, %v552_v33  ;;  %v499_v56 = vpop.permute.xlu0 %498 }
 0x3e6   :  { %v600_v42 = vsel %vm598_vm7, %v574_v36, 0  ;;  %v644_v45 = vsel %vm598_vm7, %v578_v39, 0  ;;  %v559_v46 = vsel %vm551_vm5, %v557_v32, %v558_v25  ;;  %v570_v47 = vsel %vm551_vm5, %v539_v41, %v557_v32 }
 0x3e7   :  { %1770 = vmatpush3.bf16.msra.mxu0 %v600_v42  ;;  %1782 = vmatpush3.bf16.msra.mxu1 %v644_v45  ;;  %v572_v48 = vpack.c.bf16 %v2287_v5, %v567_v37  ;;  %v576_v49 = vpack.c.bf16 %v2290_v6, %v568_v38  ;;  %v573_v50 = vpack.c.bf16 %v554_v43, %v569_v44  ;;  %v1941_v54 = vunpack.i.h.bf16 %v1939_v51 }
 0x3e8   :  { %1771 = vmatprep.subr.bf16.mxu0 %v2064_v2  ;;  %1783 = vmatprep.subr.bf16.mxu1 %v2064_v2  ;;  %v577_v52 = vpack.c.bf16 %v559_v46, %v570_v47  ;;  %v1630_v58 = vpack.c.bf16 %v1940_v53, %v1936_v55 }
 0x3e9   :  { %v1636_v59 = vpack.c.bf16 %v499_v56, %v1941_v54 }
 0x3eb   :  { %1772 = vmatpush3.bf16.msra.mxu0 %v573_v50  ;;  %1784 = vmatpush3.bf16.msra.mxu1 %v577_v52 }
 0x3ec   :  { %1773 = vmatprep.subr.bf16.mxu0 %v2064_v2  ;;  %1785 = vmatprep.subr.bf16.mxu1 %v2064_v2 }
 0x3ef   :  { %1774 = vmatpush3.bf16.msra.mxu0 %v572_v48  ;;  %1786 = vmatpush3.bf16.msra.mxu1 %v576_v49 }
 0x3f0   :  { %1775 = vmatprep.subr.bf16.mxu0 %v2064_v2  ;;  %1787 = vmatprep.subr.bf16.mxu1 %v2064_v2  ;;  %v587_v6 = vpop.permute.xlu1 %586 }
 0x3f2   :  { %v582_v61 = vpop.permute.xlu0 %581 }
 0x3f3   :  { %1776 = vmatpush3.bf16.msk.msra.mxu0 %vm2257_vm8, %v1630_v58  ;;  %1788 = vmatpush3.bf16.msk.msra.mxu1 %vm2257_vm8, %v1636_v59 }
 0x3f4   :  { %1793 = vmatprep.subr.bf16.mxu0 %v2064_v2  ;;  %1805 = vmatprep.subr.bf16.mxu1 %v2064_v2 }
 0x3f6   :  { %1778 = vmatmul.mubr.msk.bf16.vlgmr.msra.gmra.mxu0 %vm594_vm9, %v2025_v60  ;;  %1790 = vmatmul.mubr.msk.bf16.vlgmr.msra.gmra.mxu1 %vm594_vm9, %v2025_v60 }
 0x3f7   :  { %1801 = vmatprep.mubr.msk.bf16.mxu0 %vm2065_vm0, %v2064_v2  ;;  %1813 = vmatprep.mubr.msk.bf16.mxu1 %vm2065_vm0, %v2064_v2 }
 0x4b6   :  { %v636_v62 = vpop.f32.mrf.mxu0  ;;  %v680_v0 = vpop.f32.mrf.mxu1 }
 0x4b7   :  { %v637_v63 = vadd.f32 %v636_v62, %v582_v61  ;;  %v681_v1 = vadd.f32 %v680_v0, %v582_v61 }
 0x4b8   :  { %v1779_v3 = vpop.f32.mrf.mxu0  ;;  %v1791_v4 = vpop.f32.mrf.mxu1 }
 0x4b9   :  { %v687_v5 = vsel %vm428_vm10, %v637_v63, 0.0  ;;  %v688_v8 = vsel %vm428_vm10, %v681_v1, 0.0 }
 0x4ba   :  { %v639_v7 = vpop.f32.mrf.mxu0  ;;  %v683_v12 = vpop.f32.mrf.mxu1  ;;  %v689_v13 = vadd.f32 %v688_v8, %v687_v5  ;;  %v740_v8 = vld [vmem:[%s2560_s19] sm:$0xf] }
 0x4bb   :  { %v640_v9 = vadd.f32 %v639_v7, %v587_v6  ;;  %v684_v14 = vadd.f32 %v683_v12, %v587_v6 }
 0x4bc   :  { %v1780_v15 = vpop.f32.mrf.mxu0  ;;  %v1792_v16 = vpop.f32.mrf.mxu1  ;;  %690 = vadd.xlane.f32.xlu0 %v689_v13 }
 0x4bd   :  { %v692_v17 = vsel %vm428_vm10, %v640_v9, 0.0  ;;  %v693_v18 = vsel %vm428_vm10, %v684_v14, 0.0  ;;  %v1962_v16 = vpack.i.bf16 %v2211_v11, %v2207_v10 }
 0x4be   :  { %v694_v20 = vadd.f32 %v693_v18, %v692_v17  ;;  %v1117_v17 = vld [vmem:[%s2550_s9] sm:$0xff] }
 0x4c0   :  { %695 = vadd.xlane.f32.xlu1 %v694_v20 }
 0x545   :  { %v691_v21 = vpop.xlane.xlu0 %690 }
 0x546   :  { %v697_v22 = vmul.f32 0.055555556, %v691_v21 }
 0x548   :  { %v699_v23 = vsub.f32 %v637_v63, %v697_v22  ;;  %v701_v25 = vsub.f32 %v681_v1, %v697_v22 }
 0x549   :  { %v696_v27 = vpop.xlane.xlu1 %695 }
 0x54a   :  { %v698_v28 = vmul.f32 0.055555556, %v696_v27  ;;  %v703_v29 = vmul.f32 %v699_v23, %v699_v23  ;;  %v705_v30 = vmul.f32 %v701_v25, %v701_v25 }
 0x54c   :  { %v700_v31 = vsub.f32 %v640_v9, %v698_v28  ;;  %v702_v32 = vsub.f32 %v684_v14, %v698_v28  ;;  %v707_v33 = vsel %vm428_vm10, %v703_v29, 0.0  ;;  %v708_v34 = vsel %vm428_vm10, %v705_v30, 0.0 }
 0x54d   :  { %v709_v19 = vadd.f32 %v708_v34, %v707_v33 }
 0x54e   :  { %v704_v36 = vmul.f32 %v700_v31, %v700_v31  ;;  %v706_v37 = vmul.f32 %v702_v32, %v702_v32 }
 0x54f   :  { %710 = vadd.xlane.f32.xlu1 %v709_v19 }
 0x550   :  { %v712_v38 = vsel %vm428_vm10, %v704_v36, 0.0  ;;  %v713_v39 = vsel %vm428_vm10, %v706_v37, 0.0 }
 0x551   :  { %v714_v40 = vadd.f32 %v713_v39, %v712_v38 }
 0x553   :  { %715 = vadd.xlane.f32.xlu0 %v714_v40 }
 0x5d8   :  { %v711_v41 = vpop.xlane.xlu1 %710 }
 0x5d9   :  { %v717_v42 = vmul.f32 0.055555556, %v711_v41 }
 0x5db   :  { %v719_v43 = vadd.f32 1e-05, %v717_v42 }
 0x5dc   :  { %v716_v44 = vpop.xlane.xlu0 %715 }
 0x5dd   :  { %2032 = vrsqrt.f32 %v719_v43  ;;  %v718_v45 = vmul.f32 0.055555556, %v716_v44 }
 0x5df   :  { %v720_v46 = vadd.f32 1e-05, %v718_v45 }
 0x5e1   :  { %2034 = vrsqrt.f32 %v720_v46 }
 0x5ea   :  { %v2033_v47 = vpop.eup %2032 }
 0x5eb   :  { %v723_v48 = vmul.f32 %v2033_v47, %v699_v23  ;;  %v725_v49 = vmul.f32 %v2033_v47, %v701_v25 }
 0x5ed   :  { %vm727_vm11 = vcmp.ge.f32.partialorder %v723_v48, 0.0  ;;  %vm729_vm12 = vcmp.ge.f32.partialorder %v725_v49, 0.0  ;;  %v731_v50 = vmul.f32 0.01, %v723_v48  ;;  %v733_v51 = vmul.f32 0.01, %v725_v49 }
 0x5ee   :  { %v2035_v52 = vpop.eup %2034 }
 0x5ef   :  { %v735_v53 = vsel %vm727_vm11, %v723_v48, %v731_v50  ;;  %v737_v54 = vsel %vm729_vm12, %v725_v49, %v733_v51  ;;  %v724_v55 = vmul.f32 %v2035_v52, %v700_v31  ;;  %v726_v56 = vmul.f32 %v2035_v52, %v702_v32 }
 0x5f0   :  { %v1947_v58 = vpack.i.bf16 %v737_v54, %v735_v53  ;;  %v777_v61 = vrot.slane %v735_v53, 6  ;;  %v781_v62 = vrot.slane %v737_v54, 6 }
 0x5f1   :  { %vm728_vm13 = vcmp.ge.f32.partialorder %v724_v55, 0.0  ;;  %vm730_vm14 = vcmp.ge.f32.partialorder %v726_v56, 0.0  ;;  %v732_v59 = vmul.f32 0.01, %v724_v55  ;;  %v734_v60 = vmul.f32 0.01, %v726_v56 }
 0x5f2   :  { %1948 = vrot.lane.b32.xlu1 %v1947_v58, %s2067_s2  ;;  %v809_v7 = vsel %vm530_vm15, %v2318_v35, %v777_v61  ;;  %v810_v13 = vsel %vm530_vm15, %v2318_v35, %v781_v62 }
 0x5f3   :  { %v736_v63 = vsel %vm728_vm13, %v724_v55, %v732_v59  ;;  %v738_v0 = vsel %vm730_vm14, %v726_v56, %v734_v60  ;;  %v2071_v55 = vmov 65535  }
 0x5f4   :  { %v782_v1 = vrot.slane %v738_v0, 6  ;;  %v1942_v3 = vpack.i.bf16 %v738_v0, %v736_v63  ;;  %v778_v4 = vrot.slane %v736_v63, 6  ;;  %v1952_v5 = vpack.i.bf16 %v736_v63, %v735_v53 }
 0x5f5   :  { %v1957_v14 = vpack.i.bf16 %v738_v0, %v737_v54  ;;  %v739_v54 = vld [vmem:[%s2559_s18] sm:$0x3]  ;;  %v932_v56 = vsel %vm551_vm5, 4294967295, %v2071_v55 }
 0x5f6   :  { %1943 = vrot.lane.b32.xlu0 %v1942_v3, %s2067_s2  ;;  %1953 = vrot.lane.b32.xlu1 %v1952_v5, %s2066_s7  ;;  %v779_v6 = vsel %vm530_vm15, %v777_v61, %v778_v4  ;;  %v783_v12 = vsel %vm530_vm15, %v781_v62, %v782_v1  ;;  %v780_v42 = vsel %vm530_vm15, %v778_v4, %v2307_v24 }
 0x5f7   :  { %v814_v9 = vpack.c.bf16 %v779_v6, %v809_v7  ;;  %v818_v15 = vpack.c.bf16 %v783_v12, %v810_v13  ;;  %v2027_v6 = vld [vmem:[%s2546_s5] sm:$0x1f]  }
 0x5fa   :  { %1958 = vrot.lane.b32.xlu0 %v1957_v14, %s2066_s7  ;;  %823 = vperm.xlu1 %1921, %v740_v8  }
 0x5fe   :  { %1963 = vrot.lane.b32.xlu0 %v1962_v16, %s2067_s2  ;;  %1968 = vrot.lane.b32.xlu1 %v1962_v16, %s2070_s23 }
 0x602   :  { %1973 = vrot.lane.b32.xlu0 %v1962_v16, %s2069_s1  ;;  %1978 = vrot.lane.b32.xlu1 %v1962_v16, %s2066_s7 }
 0x606   :  { %1169 = vperm.xlu0 %1920, %v1117_v17  }
 0x664   :  { %v1949_v35 = vpop.permute.xlu1 %1948 }
 0x665   :  { %v1951_v18 = vunpack.i.h.bf16 %v1949_v35  ;;  %v1950_v20 = vunpack.i.l.bf16 %v1949_v35 }
 0x667   :  { %v775_v28 = vsel %vm316_vm4, %v1951_v18, 0.0  ;;  %v773_v29 = vsel %vm316_vm4, %v1950_v20, 0.0 }
 0x668   :  { %v1944_v21 = vpop.permute.xlu0 %1943  ;;  %v799_v34 = vrot.slane %v775_v28, 4  ;;  %v795_v19 = vrot.slane %v773_v29, 4  ;;  %v1954_v47 = vpop.permute.xlu1 %1953 }
 0x669   :  { %v1946_v22 = vunpack.i.h.bf16 %v1944_v21  ;;  %v1945_v23 = vunpack.i.l.bf16 %v1944_v21  ;;  %v1956_v49 = vunpack.i.h.bf16 %v1954_v47 }
 0x66a   :  { %v811_v43 = vsel %vm551_vm5, %v780_v42, %v795_v19 }
 0x66b   :  { %v776_v25 = vsel %vm316_vm4, %v1946_v22, 0.0  ;;  %v774_v27 = vsel %vm316_vm4, %v1945_v23, 0.0  ;;  %vm931_vm4 = vcmask 1044480  }
 0x66c   :  { %v800_v30 = vrot.slane %v776_v25, 4  ;;  %v796_v31 = vrot.slane %v774_v27, 4  ;;  %v1959_v48 = vpop.permute.xlu0 %1958  ;;  %v933_v58 = vsel %vm931_vm4, %v932_v56, 0 }
 0x66d   :  { %v1961_v50 = vunpack.i.h.bf16 %v1959_v48  ;;  %v1960_v51 = vunpack.i.l.bf16 %v1959_v48  ;;  %v935_v59 = vand.u32 %v2026_v57, %v933_v58  ;;  %v1031_v22 = vand.u32 %v2027_v6, %v933_v58 }
 0x66e   :  { %v798_v32 = vsel %vm551_vm5, %v796_v31, %v2309_v26  ;;  %v802_v33 = vsel %vm551_vm5, %v800_v30, %v2309_v26  ;;  %v797_v40 = vsel %vm551_vm5, %v795_v19, %v796_v31  ;;  %v801_v41 = vsel %vm551_vm5, %v799_v34, %v800_v30 }
 0x66f   :  { %v816_v36 = vpack.c.bf16 %v798_v32, %v798_v32  ;;  %v820_v37 = vpack.c.bf16 %v802_v33, %v802_v33  ;;  %v784_v26 = vsel %vm530_vm15, %v782_v1, %v2307_v24  ;;  %v815_v45 = vpack.c.bf16 %v797_v40, %v811_v43 }
 0x670   :  { %v812_v44 = vsel %vm551_vm5, %v784_v26, %v799_v34  ;;  %v1955_v24 = vunpack.i.l.bf16 %v1954_v47  ;;  %v1648_v53 = vpack.c.bf16 %v1961_v50, %v1960_v51  ;;  %v1964_v62 = vpop.permute.xlu0 %1963  ;;  %v1176_v30 = vsel %vm530_vm15, 4294967295, %v2071_v55  ;;  %v1116_v47 = vld [vmem:[%s2549_s8] sm:$0xf] }
 0x671   :  { %v830_v38 = vsel %vm598_vm7, %v816_v36, 0  ;;  %v873_v39 = vsel %vm598_vm7, %v820_v37, 0  ;;  %v819_v46 = vpack.c.bf16 %v801_v41, %v812_v44  ;;  %v1966_v63 = vunpack.i.h.bf16 %v1964_v62 }
 0x672   :  { %1794 = vmatpush3.bf16.msra.mxu0 %v830_v38  ;;  %1806 = vmatpush3.bf16.msra.mxu1 %v873_v39  ;;  %v1642_v52 = vpack.c.bf16 %v1956_v49, %v1955_v24  ;;  %v1965_v0 = vunpack.i.l.bf16 %v1964_v62  ;;  %v1177_v37 = vsel %vm598_vm7, %v1176_v30, 0  ;;  %v1149_v38 = vrot.slane %v2207_v10, 1 }
 0x673   :  { %1795 = vmatprep.subr.bf16.mxu0 %v2064_v2  ;;  %1807 = vmatprep.subr.bf16.mxu1 %v2064_v2  ;;  %v1150_v40 = vrot.slane %v2211_v11, 1  ;;  %vm1332_vm15 = vcmask 195584  }
 0x674   :  { %v1974_v23 = vpop.permute.xlu0 %1973 }
 0x675   :  { %v824_v60 = vpop.permute.xlu1 %823  ;;  %v1975_v31 = vunpack.i.l.bf16 %v1974_v23  ;;  %v1976_v33 = vunpack.i.h.bf16 %v1974_v23 }
 0x676   :  { %1796 = vmatpush3.bf16.msra.mxu0 %v815_v45  ;;  %1808 = vmatpush3.bf16.msra.mxu1 %v819_v46 }
 0x677   :  { %1797 = vmatprep.subr.bf16.mxu0 %v2064_v2  ;;  %1809 = vmatprep.subr.bf16.mxu1 %v2064_v2 }
 0x679   :  { %v1969_v61 = vpop.permute.xlu1 %1968 }
 0x67a   :  { %1798 = vmatpush3.bf16.msra.mxu0 %v814_v9  ;;  %1810 = vmatpush3.bf16.msra.mxu1 %v818_v15  ;;  %v1971_v1 = vunpack.i.h.bf16 %v1969_v61  ;;  %v1970_v3 = vunpack.i.l.bf16 %v1969_v61 }
 0x67b   :  { %1799 = vmatprep.subr.bf16.mxu0 %v2064_v2  ;;  %1811 = vmatprep.subr.bf16.mxu1 %v2064_v2 }
 0x67d   :  { %v1979_v17 = vpop.permute.xlu1 %1978 }
 0x67e   :  { %1800 = vmatpush3.bf16.msk.msra.mxu0 %vm2257_vm8, %v1642_v52  ;;  %1812 = vmatpush3.bf16.msk.msra.mxu1 %vm2257_vm8, %v1648_v53  ;;  %vm1146_vm8 = vcmask 121856   ;;  %v1980_v32 = vunpack.i.l.bf16 %v1979_v17  ;;  %v1981_v36 = vunpack.i.h.bf16 %v1979_v17 }
 0x67f   :  { %1817 = vmatprep.subr.bf16.mxu0 %v2064_v2  ;;  %1823 = vmatprep.subr.bf16.mxu1 %v2064_v2  ;;  %v1148_v9 = vsel %vm1146_vm8, %v1966_v63, %v1971_v1  ;;  %v1147_v12 = vsel %vm1146_vm8, %v1965_v0, %v1970_v3 }
 0x680   :  { %v1156_v35 = vrot.slane %v1148_v9, 2  ;;  %v1155_v18 = vrot.slane %v1147_v12, 2  ;;  %v1132_v39 = vsel %vm299_vm6, %v1975_v31, %v1980_v32  ;;  %v1133_v41 = vsel %vm299_vm6, %v1976_v33, %v1981_v36 }
 0x681   :  { %1802 = vmatmul.mubr.msk.bf16.vlgmr.msra.gmra.mxu0 %vm594_vm9, %v739_v54  ;;  %1814 = vmatmul.mubr.msk.bf16.vlgmr.msra.gmra.mxu1 %vm594_vm9, %v739_v54  ;;  %v1159_v43 = vsel %vm269_vm2, %v1132_v39, %v1149_v38  ;;  %v1160_v45 = vsel %vm269_vm2, %v1133_v41, %v1150_v40  ;;  %vm1172_vm2 = vcmask 171008   ;;  %v1170_v1 = vpop.permute.xlu0 %1169 }
 0x682   :  { %1819 = vmatprep.mubr.msk.bf16.mxu0 %vm2065_vm0, %v2064_v2  ;;  %1825 = vmatprep.mubr.msk.bf16.mxu1 %vm2065_vm0, %v2064_v2  ;;  %v1166_v34 = vpack.c.bf16 %v1156_v35, %v1156_v35  ;;  %v1164_v19 = vpack.c.bf16 %v1155_v18, %v1155_v18  ;;  %v1161_v44 = vsel %vm276_vm3, %v1149_v38, %v1155_v18 }
 0x683   :  { %1818 = vmatpush3.bf16.msra.mxu0 %v935_v59  ;;  %1824 = vmatpush3.bf16.msra.mxu1 %v935_v59  ;;  %v1162_v10 = vsel %vm276_vm3, %v1150_v40, %v1156_v35  ;;  %v1163_v11 = vpack.c.bf16 %v1161_v44, %v1159_v43  ;;  %v1292_v40 = vld [vmem:[%s2552_s11] sm:$0xff] }
 0x684   :  { %1829 = vmatprep.subr.bf16.mxu0 %v2064_v2  ;;  %1835 = vmatprep.subr.bf16.mxu1 %v2064_v2  ;;  %v1179_v42 = vand.u32 %v1177_v37, %v1164_v19  ;;  %v1222_v26 = vand.u32 %v1177_v37, %v1166_v34  ;;  %v1165_v46 = vpack.c.bf16 %v1162_v10, %v1160_v45 }
 0x741   :  { %v866_v4 = vpop.f32.mrf.mxu0  ;;  %v909_v5 = vpop.f32.mrf.mxu1 }
 0x742   :  { %v867_v7 = vadd.f32 %v866_v4, %v824_v60  ;;  %v910_v8 = vadd.f32 %v909_v5, %v824_v60 }
 0x743   :  { %v1803_v13 = vpop.f32.mrf.mxu0  ;;  %v1815_v14 = vpop.f32.mrf.mxu1 }
 0x744   :  { %v919_v15 = vpack.c.bf16 %v867_v7, %v867_v7  ;;  %v920_v16 = vpack.c.bf16 %v910_v8, %v910_v8 }
 0x745   :  { %v869_v20 = vpop.f32.mrf.mxu0  ;;  %v912_v21 = vpop.f32.mrf.mxu1 }
 0x746   :  { %v922_v25 = vrot.slane %v919_v15, 1  ;;  %v978_v27 = vrot.slane %v920_v16, 1 }
 0x747   :  { %v1804_v28 = vpop.f32.mrf.mxu0  ;;  %v1816_v29 = vpop.f32.mrf.mxu1 }
 0x748   :  { %1820 = vmatmul.mubr.msk.bf16.vlgmr.msra.gmra.mxu0 %vm428_vm10, %v922_v25  ;;  %1826 = vmatmul.mubr.msk.bf16.vlgmr.msra.gmra.mxu1 %vm428_vm10, %v978_v27 }
 0x749   :  { %1830 = vmatpush3.bf16.msra.mxu0 %v1031_v22  ;;  %1836 = vmatpush3.bf16.msra.mxu1 %v1031_v22 }
 0x74a   :  { %1831 = vmatprep.mubr.msk.bf16.mxu0 %vm2065_vm0, %v2064_v2  ;;  %1837 = vmatprep.mubr.msk.bf16.mxu1 %vm2065_vm0, %v2064_v2 }
 0x74b   :  { %1841 = vmatprep.subr.bf16.mxu0 %v2064_v2  ;;  %1849 = vmatprep.subr.bf16.mxu1 %v2064_v2 }
 0x750   :  { %1832 = vmatmul.mubr.msk.bf16.vlgmr.msra.gmra.mxu0 %vm428_vm10, %v919_v15  ;;  %1838 = vmatmul.mubr.msk.bf16.vlgmr.msra.gmra.mxu1 %vm428_vm10, %v920_v16 }
 0x751   :  { %1842 = vmatpush3.bf16.msra.mxu0 %v1179_v42  ;;  %1850 = vmatpush3.bf16.msra.mxu1 %v1222_v26 }
 0x752   :  { %1843 = vmatprep.subr.bf16.mxu0 %v2064_v2  ;;  %1851 = vmatprep.subr.bf16.mxu1 %v2064_v2 }
 0x753   :  { %1845 = vmatprep.mubr.msk.bf16.mxu0 %vm2065_vm0, %v2064_v2  ;;  %1853 = vmatprep.mubr.msk.bf16.mxu1 %vm2065_vm0, %v2064_v2 }
 0x755   :  { %1844 = vmatpush3.bf16.msra.mxu0 %v1163_v11  ;;  %1852 = vmatpush3.bf16.msra.mxu1 %v1165_v46 }
 0x756   :  { %1857 = vmatprep.subr.bf16.mxu0 %v2064_v2  ;;  %1865 = vmatprep.subr.bf16.mxu1 %v2064_v2 }
 0x758   :  { %1846 = vmatmul.mubr.msk.bf16.vlgmr.msra.gmra.mxu0 %vm1172_vm2, %v1116_v47  ;;  %1854 = vmatmul.mubr.msk.bf16.vlgmr.msra.gmra.mxu1 %vm1172_vm2, %v1116_v47 }
 0x759   :  { %1861 = vmatprep.mubr.msk.bf16.mxu0 %vm2065_vm0, %v2064_v2  ;;  %1869 = vmatprep.mubr.msk.bf16.mxu1 %vm2065_vm0, %v2064_v2 }
 0x808   :  { %v971_v48 = vpop.f32.mrf.mxu0  ;;  %v1016_v49 = vpop.f32.mrf.mxu1 }
 0x80a   :  { %v1821_v24 = vpop.f32.mrf.mxu0  ;;  %v1827_v50 = vpop.f32.mrf.mxu1 }
 0x80c   :  { %v974_v51 = vpop.f32.mrf.mxu0  ;;  %v1019_v52 = vpop.f32.mrf.mxu1 }
 0x80e   :  { %v1822_v53 = vpop.f32.mrf.mxu0  ;;  %v1828_v54 = vpop.f32.mrf.mxu1 }
 0x810   :  { %v1067_v57 = vpop.f32.mrf.mxu0  ;;  %v1110_v55 = vpop.f32.mrf.mxu1 }
 0x811   :  { %v2472_v56 = vadd.f32 %v1067_v57, %v971_v48  ;;  %v2474_v58 = vadd.f32 %v1110_v55, %v1016_v49 }
 0x812   :  { %v1833_v59 = vpop.f32.mrf.mxu0  ;;  %v1839_v60 = vpop.f32.mrf.mxu1 }
 0x814   :  { %v1070_v61 = vpop.f32.mrf.mxu0  ;;  %v1113_v62 = vpop.f32.mrf.mxu1 }
 0x815   :  { %v1291_v61 = vld [vmem:[%s2551_s10] sm:$0xf] }
 0x816   :  { %v1834_v63 = vpop.f32.mrf.mxu0  ;;  %v1840_v0 = vpop.f32.mrf.mxu1 }
 0x818   :  { %v1215_v3 = vpop.f32.mrf.mxu0  ;;  %v1258_v4 = vpop.f32.mrf.mxu1 }
 0x819   :  { %v1216_v5 = vadd.f32 %v1215_v3, %v1170_v1  ;;  %v1259_v6 = vadd.f32 %v1258_v4, %v1170_v1 }
 0x81a   :  { %v1847_v7 = vpop.f32.mrf.mxu0  ;;  %v1855_v8 = vpop.f32.mrf.mxu1 }
 0x81b   :  { %v1264_v9 = vsel %vm90_vm1, %v1216_v5, 0.0  ;;  %v1265_v12 = vsel %vm90_vm1, %v1259_v6, 0.0 }
 0x81c   :  { %v1218_v13 = vpop.f32.mrf.mxu0  ;;  %v1261_v14 = vpop.f32.mrf.mxu1  ;;  %v1266_v15 = vadd.f32 %v1265_v12, %v1264_v9 }
 0x81e   :  { %v1856_v16 = vpop.f32.mrf.mxu1  ;;  %1267 = vadd.xlane.f32.xlu1 %v1266_v15  ;;  %v1848_v17 = vpop.f32.mrf.mxu0 }
 0x8a7   :  { %v1268_v35 = vpop.xlane.xlu1 %1267 }
 0x8a8   :  { %v1270_v18 = vmul.f32 0.03125, %v1268_v35 }
 0x8aa   :  { %v1271_v20 = vsub.f32 %v1216_v5, %v1270_v18  ;;  %v1272_v21 = vsub.f32 %v1259_v6, %v1270_v18 }
 0x8ac   :  { %v1273_v22 = vmul.f32 %v1271_v20, %v1271_v20  ;;  %v1274_v23 = vmul.f32 %v1272_v21, %v1272_v21 }
 0x8ae   :  { %v1275_v25 = vsel %vm90_vm1, %v1273_v22, 0.0  ;;  %v1276_v27 = vsel %vm90_vm1, %v1274_v23, 0.0 }
 0x8af   :  { %v1277_v28 = vadd.f32 %v1276_v27, %v1275_v25 }
 0x8b1   :  { %1278 = vadd.xlane.f32.xlu0 %v1277_v28 }
 0x93a   :  { %v1279_v29 = vpop.xlane.xlu0 %1278 }
 0x93b   :  { %v1280_v30 = vmul.f32 0.03125, %v1279_v29 }
 0x93d   :  { %v1281_v31 = vadd.f32 1e-05, %v1280_v30 }
 0x93f   :  { %2036 = vrsqrt.f32 %v1281_v31 }
 0x94c   :  { %v2037_v32 = vpop.eup %2036 }
 0x94d   :  { %v1283_v33 = vmul.f32 %v2037_v32, %v1271_v20  ;;  %v1284_v34 = vmul.f32 %v2037_v32, %v1272_v21 }
 0x94f   :  { %vm1285_vm3 = vcmp.ge.f32.partialorder %v1283_v33, 0.0  ;;  %vm1286_vm10 = vcmp.ge.f32.partialorder %v1284_v34, 0.0  ;;  %v1287_v19 = vmul.f32 0.01, %v1283_v33  ;;  %v1288_v36 = vmul.f32 0.01, %v1284_v34 }
 0x951   :  { %v1289_v37 = vsel %vm1285_vm3, %v1283_v33, %v1287_v19  ;;  %v1290_v38 = vsel %vm1286_vm10, %v1284_v34, %v1288_v36 }
 0x952   :  { %v1987_v39 = vpack.i.bf16 %v1290_v38, %v1289_v37 }
 0x954   :  { %1988 = vrot.lane.b32.xlu1 %v1987_v39, %s2070_s23  ;;  %1983 = vrot.lane.b32.xlu0 %v1987_v39, %s2067_s2 }
 0x958   :  { %1993 = vrot.lane.b32.xlu1 %v1987_v39, %s2069_s1  ;;  %1998 = vrot.lane.b32.xlu0 %v1987_v39, %s2066_s7 }
 0x95c   :  { %1329 = vperm.xlu1 %1921, %v1292_v40  }
 0x9c6   :  { %v1989_v41 = vpop.permute.xlu1 %1988  ;;  %v1984_v42 = vpop.permute.xlu0 %1983 }
 0x9c7   :  { %v1991_v26 = vunpack.i.h.bf16 %v1989_v41  ;;  %v1990_v43 = vunpack.i.l.bf16 %v1989_v41  ;;  %v1986_v44 = vunpack.i.h.bf16 %v1984_v42  ;;  %v1985_v45 = vunpack.i.l.bf16 %v1984_v42 }
 0x9c9   :  { %v1321_v10 = vsel %vm1146_vm8, %v1985_v45, %v1990_v43  ;;  %v1322_v11 = vsel %vm1146_vm8, %v1986_v44, %v1991_v26 }
 0x9ca   :  { %v1994_v46 = vpop.permute.xlu1 %1993  ;;  %v1999_v47 = vpop.permute.xlu0 %1998  ;;  %v1324_v48 = vpack.c.bf16 %v1321_v10, %v1321_v10  ;;  %v1326_v49 = vpack.c.bf16 %v1322_v11, %v1322_v11 }
 0x9cb   :  { %v1996_v24 = vunpack.i.h.bf16 %v1994_v46  ;;  %v1995_v50 = vunpack.i.l.bf16 %v1994_v46  ;;  %v2001_v51 = vunpack.i.h.bf16 %v1999_v47  ;;  %v2000_v52 = vunpack.i.l.bf16 %v1999_v47 }
 0x9cc   :  { %v1337_v53 = vsel %vm551_vm5, %v1324_v48, 0  ;;  %v1380_v54 = vsel %vm551_vm5, %v1326_v49, 0 }
 0x9cd   :  { %v1308_v57 = vsel %vm299_vm6, %v1996_v24, %v2001_v51  ;;  %v1307_v55 = vsel %vm299_vm6, %v1995_v50, %v2000_v52  ;;  %1858 = vmatpush3.bf16.msra.mxu0 %v1337_v53  ;;  %1866 = vmatpush3.bf16.msra.mxu1 %v1380_v54 }
 0x9ce   :  { %v1325_v59 = vpack.c.bf16 %v1290_v38, %v1308_v57  ;;  %v1323_v60 = vpack.c.bf16 %v1289_v37, %v1307_v55  ;;  %1859 = vmatprep.subr.bf16.mxu0 %v2064_v2  ;;  %1867 = vmatprep.subr.bf16.mxu1 %v2064_v2  ;;  %v1449_v37 = vld [vmem:[%s2554_s13] sm:$0x3] }
 0x9d1   :  { %1860 = vmatpush3.bf16.msra.mxu0 %v1323_v60  ;;  %1868 = vmatpush3.bf16.msra.mxu1 %v1325_v59 }
 0x9d2   :  { %1873 = vmatprep.subr.bf16.mxu0 %v2064_v2  ;;  %1881 = vmatprep.subr.bf16.mxu1 %v2064_v2 }
 0x9d4   :  { %1862 = vmatmul.mubr.msk.bf16.vlgmr.msra.gmra.mxu0 %vm1332_vm15, %v1291_v61  ;;  %1870 = vmatmul.mubr.msk.bf16.vlgmr.msra.gmra.mxu1 %vm1332_vm15, %v1291_v61 }
 0x9d5   :  { %1877 = vmatprep.mubr.msk.bf16.mxu0 %vm2065_vm0, %v2064_v2  ;;  %1885 = vmatprep.mubr.msk.bf16.mxu1 %vm2065_vm0, %v2064_v2 }
 0x9d7   :  { %v1330_v62 = vpop.permute.xlu1 %1329 }
 0xa94   :  { %v1373_v63 = vpop.f32.mrf.mxu0  ;;  %v1416_v0 = vpop.f32.mrf.mxu1 }
 0xa95   :  { %v1374_v1 = vadd.f32 %v1373_v63, %v1330_v62  ;;  %v1417_v3 = vadd.f32 %v1416_v0, %v1330_v62  ;;  %v2040_v62 = vld [vmem:[%s2572_s26] sm:$0x7f]  ;;  %v2041_v63 = vld [vmem:[%s2572_s26 + $0x8] sm:$0x7f] }
 0xa96   :  { %v1863_v4 = vpop.f32.mrf.mxu0  ;;  %v1871_v5 = vpop.f32.mrf.mxu1  ;;  %v1579_v0 = vadd.f32 %v2041_v63, %v2474_v58 }
 0xa97   :  { %v1422_v6 = vsel %vm90_vm1, %v1374_v1, 0.0  ;;  %v1423_v7 = vsel %vm90_vm1, %v1417_v3, 0.0 }
 0xa98   :  { %v1376_v8 = vpop.f32.mrf.mxu0  ;;  %v1419_v9 = vpop.f32.mrf.mxu1  ;;  %v1424_v12 = vadd.f32 %v1423_v7, %v1422_v6 }
 0xa9a   :  { %v1872_v13 = vpop.f32.mrf.mxu1  ;;  %1425 = vadd.xlane.f32.xlu0 %v1424_v12  ;;  %v1864_v14 = vpop.f32.mrf.mxu0 }
 0xb23   :  { %v1426_v15 = vpop.xlane.xlu0 %1425 }
 0xb24   :  { %v1427_v16 = vmul.f32 0.03125, %v1426_v15 }
 0xb26   :  { %v1428_v17 = vsub.f32 %v1374_v1, %v1427_v16  ;;  %v1429_v35 = vsub.f32 %v1417_v3, %v1427_v16 }
 0xb28   :  { %v1430_v18 = vmul.f32 %v1428_v17, %v1428_v17  ;;  %v1431_v20 = vmul.f32 %v1429_v35, %v1429_v35 }
 0xb2a   :  { %v1432_v21 = vsel %vm90_vm1, %v1430_v18, 0.0  ;;  %v1433_v22 = vsel %vm90_vm1, %v1431_v20, 0.0  ;;  %vm1582_vm1 = vcmask 123904  }
 0xb2b   :  { %v1434_v23 = vadd.f32 %v1433_v22, %v1432_v21 }
 0xb2d   :  { %1435 = vadd.xlane.f32.xlu1 %v1434_v23 }
 0xbb6   :  { %v1436_v25 = vpop.xlane.xlu1 %1435 }
 0xbb7   :  { %v1437_v27 = vmul.f32 0.03125, %v1436_v25 }
 0xbb9   :  { %v1438_v28 = vadd.f32 1e-05, %v1437_v27 }
 0xbbb   :  { %2038 = vrsqrt.f32 %v1438_v28 }
 0xbc8   :  { %v2039_v29 = vpop.eup %2038 }
 0xbc9   :  { %v1440_v30 = vmul.f32 %v2039_v29, %v1428_v17  ;;  %v1441_v31 = vmul.f32 %v2039_v29, %v1429_v35 }
 0xbcb   :  { %vm1442_vm0 = vcmp.ge.f32.partialorder %v1440_v30, 0.0  ;;  %vm1443_vm7 = vcmp.ge.f32.partialorder %v1441_v31, 0.0  ;;  %v1444_v32 = vmul.f32 0.01, %v1440_v30  ;;  %v1445_v33 = vmul.f32 0.01, %v1441_v31 }
 0xbcd   :  { %v1446_v34 = vsel %vm1442_vm0, %v1440_v30, %v1444_v32  ;;  %v1447_v19 = vsel %vm1443_vm7, %v1441_v31, %v1445_v33 }
 0xbce   :  { %v2007_v36 = vpack.i.bf16 %v1447_v19, %v1446_v34 }
 0xbd0   :  { %2008 = vrot.lane.b32.xlu1 %v2007_v36, %s2070_s23  ;;  %2003 = vrot.lane.b32.xlu0 %v2007_v36, %s2067_s2  ;;  %s2577_s2 = sld [smem:[#allocation11_spill]] }
 0xbd4   :  { %2018 = vrot.lane.b32.xlu1 %v2007_v36, %s2066_s7  ;;  %2013 = vrot.lane.b32.xlu0 %v2007_v36, %s2069_s1 }
 0xbd6   :  { %v1448_v55 = vld [vmem:[%s2577_s2] sm:$0x1] }
 0xbd8   :  { %1486 = vperm.xlu0 %1920, %v1449_v37  }
 0xc42   :  { %v2009_v38 = vpop.permute.xlu1 %2008  ;;  %v2004_v39 = vpop.permute.xlu0 %2003 }
 0xc43   :  { %v2011_v40 = vunpack.i.h.bf16 %v2009_v38  ;;  %v2010_v41 = vunpack.i.l.bf16 %v2009_v38  ;;  %v2006_v42 = vunpack.i.h.bf16 %v2004_v39  ;;  %v2005_v26 = vunpack.i.l.bf16 %v2004_v39 }
 0xc45   :  { %v1478_v43 = vsel %vm1146_vm8, %v2005_v26, %v2010_v41  ;;  %v1479_v44 = vsel %vm1146_vm8, %v2006_v42, %v2011_v40 }
 0xc46   :  { %v2019_v45 = vpop.permute.xlu1 %2018  ;;  %v2014_v10 = vpop.permute.xlu0 %2013  ;;  %v1481_v11 = vpack.c.bf16 %v1478_v43, %v1478_v43  ;;  %v1483_v46 = vpack.c.bf16 %v1479_v44, %v1479_v44 }
 0xc47   :  { %v2021_v47 = vunpack.i.h.bf16 %v2019_v45  ;;  %v2020_v48 = vunpack.i.l.bf16 %v2019_v45  ;;  %v2016_v49 = vunpack.i.h.bf16 %v2014_v10  ;;  %v2015_v24 = vunpack.i.l.bf16 %v2014_v10 }
 0xc48   :  { %v1493_v50 = vsel %vm551_vm5, %v1481_v11, 0  ;;  %v1536_v51 = vsel %vm551_vm5, %v1483_v46, 0 }
 0xc49   :  { %v1465_v52 = vsel %vm299_vm6, %v2016_v49, %v2021_v47  ;;  %v1464_v53 = vsel %vm299_vm6, %v2015_v24, %v2020_v48  ;;  %1874 = vmatpush3.bf16.msra.mxu0 %v1493_v50  ;;  %1882 = vmatpush3.bf16.msra.mxu1 %v1536_v51 }
 0xc4a   :  { %v1482_v54 = vpack.c.bf16 %v1447_v19, %v1465_v52  ;;  %v1480_v57 = vpack.c.bf16 %v1446_v34, %v1464_v53  ;;  %1875 = vmatprep.subr.bf16.mxu0 %v2064_v2  ;;  %1883 = vmatprep.subr.bf16.mxu1 %v2064_v2  ;;  %v1578_v2 = vadd.f32 %v2040_v62, %v2472_v56 }
 0xc4d   :  { %1876 = vmatpush3.bf16.msra.mxu0 %v1480_v57  ;;  %1884 = vmatpush3.bf16.msra.mxu1 %v1482_v54 }
 0xc50   :  { %1878 = vmatmul.mubr.msk.bf16.vlgmr.msra.gmra.mxu0 %vm1332_vm15, %v1448_v55  ;;  %1886 = vmatmul.mubr.msk.bf16.vlgmr.msra.gmra.mxu1 %vm1332_vm15, %v1448_v55 }
 0xc53   :  { %v1487_v59 = vpop.permute.xlu0 %1486 }
 0xd10   :  { %v1529_v60 = vpop.f32.mrf.mxu0  ;;  %v1572_v61 = vpop.f32.mrf.mxu1 }
 0xd11   :  { %v1530_v1 = vadd.f32 %v1529_v60, %v1487_v59  ;;  %v1573_v3 = vadd.f32 %v1572_v61, %v1487_v59 }
 0xd12   :  { %v1879_v4 = vpop.f32.mrf.mxu0  ;;  %v1887_v5 = vpop.f32.mrf.mxu1 }
 0xd13   :  { %v1580_v6 = vadd.f32 %v1578_v2, %v1530_v1  ;;  %v1581_v7 = vadd.f32 %v1579_v0, %v1573_v3 }
 0xd14   :  { %v1532_v8 = vpop.f32.mrf.mxu0  ;;  %v1575_v9 = vpop.f32.mrf.mxu1 }
 0xd15   :  { %1583 = vst.msk [vmem:[#allocation3] sm:$0x3] %vm1582_vm1, %v1580_v6  ;;  %1584 = vst.msk [vmem:[#allocation3 + $0x2] sm:$0x3] %vm1582_vm1, %v1581_v7 }
 0xd16   :  { %v1880_v12 = vpop.f32.mrf.mxu0  ;;  %v1888_v56 = vpop.f32.mrf.mxu1 }
 0xd17   :  { %2053 = shalt.err (!%p2050_p4)
}
 0xd18   :  { %s2073_s26 = smov 32   ;;  %s2074_s21 = smov 2  }
 0xd19   :  { %1596 = dma.vmem_to_hbm [thread:$0]  %s1591_s29, 64, %s2561_s20, [#allocation4], %s2073_s26, %s2073_s26, %s2074_s21  }
 0xd1a   :  { %2062 = dma.done.wait [#allocation4], 64  }
 0xd1b   :  { %2063 = vsyncadd [#allocation4], 4294967232 }
 0xd1c   :  { %1600 = vsyncpa [#allocation4], 1 }

</bundles_post_ra>
